<compile_context>
chip_gen: v5e
topology: v5e:2x2
jax: 0.10.0
libtpu: 0.0.40
codegen_flags: <defaults>
</compile_context>

<pallas_src>
import jax
import jax.numpy as jnp
from jax.experimental import pallas as pl
from jax.experimental.pallas import tpu as pltpu

NUM_CLASSES = 8          # module default
BOTTLENECK = 256         # bottleneck_width default
FEAT_DIM = 2048          # resnet50 fc.in_features
PAD_OUT = 128            # lane-dense padded logits width (>= NUM_CLASSES)
TB_MAX = 256             # batch tile cap (fills MXU M on v6e/v7x, VMEM-safe)


def _mlp_head_kernel(f_ref, w1_ref, b1_ref, w2_ref, b2_ref,
                     fred_ref, out_ref):
    # f_ref:  (TB, FEAT_DIM) bf16 pooled features
    # w1_ref: (FEAT_DIM, BOTTLENECK) bf16,  b1_ref: (1, BOTTLENECK) f32
    # w2_ref: (BOTTLENECK, PAD_OUT)  bf16,  b2_ref: (1, PAD_OUT)    f32
    # --- bottleneck: Linear(2048, 256) + ReLU (+ eval-mode Dropout identity) ---
    h = jnp.dot(f_ref[...], w1_ref[...], preferred_element_type=jnp.float32)
    h = jnp.maximum(h + b1_ref[...], 0.0)
    fred_ref[...] = h
    # --- classifier_layer: Linear(256, num_classes), lane-padded to 128 ---
    out_ref[...] = (jnp.dot(h.astype(jnp.bfloat16), w2_ref[...],
                            preferred_element_type=jnp.float32)
                    + b2_ref[...])


def classifier_forward(feat_nchw, w1, b1, w2, b2):
    """feat_nchw: (B, C, H, W) pre-avgpool backbone feature map (NCHW).

    w1: (2048, 256), b1: (1, 256), w2: (256, num_classes), b2: (1, num_classes)
    (linear weights stored (in, out), i.e. transposed from PyTorch).
    Returns (f_reduced, output) exactly like Classifier.forward (eval mode).
    """
    B, C, H, W = feat_nchw.shape
    assert C == FEAT_DIM

    # Tail of `features`: AdaptiveAvgPool2d((1,1)) + view(B, -1) -> (B, 2048).
    # Plain-XLA reduction: no transpose, and the kernel's input DMA is HW x smaller.
    f = jnp.mean(feat_nchw, axis=(2, 3)).astype(jnp.bfloat16)

    # bf16 MXU operands; zero-pad the tiny classifier to 128 output lanes.
    w1_b = w1.astype(jnp.bfloat16)
    w2_b = jnp.pad(w2, ((0, 0), (0, PAD_OUT - NUM_CLASSES))).astype(jnp.bfloat16)
    b1_f = b1.astype(jnp.float32)
    b2_f = jnp.pad(b2, ((0, 0), (0, PAD_OUT - NUM_CLASSES))).astype(jnp.float32)

    # Batch tile: full batch if small (block == full dim), else 256 (8-divisible).
    TB = B if B <= TB_MAX else TB_MAX
    grid = (pl.cdiv(B, TB),)

    kernel = pl.pallas_call(
        _mlp_head_kernel,
        grid=grid,
        in_specs=[
            pl.BlockSpec((TB, FEAT_DIM), lambda i: (i, 0)),          # pooled f
            pl.BlockSpec((FEAT_DIM, BOTTLENECK), lambda i: (0, 0)),  # W1 (resident)
            pl.BlockSpec((1, BOTTLENECK), lambda i: (0, 0)),         # b1 (resident)
            pl.BlockSpec((BOTTLENECK, PAD_OUT), lambda i: (0, 0)),   # W2 (resident)
            pl.BlockSpec((1, PAD_OUT), lambda i: (0, 0)),            # b2 (resident)
        ],
        out_specs=(
            pl.BlockSpec((TB, BOTTLENECK), lambda i: (i, 0)),        # f_reduced
            pl.BlockSpec((TB, PAD_OUT), lambda i: (i, 0)),           # padded logits
        ),
        out_shape=(
            jax.ShapeDtypeStruct((B, BOTTLENECK), jnp.float32),
            jax.ShapeDtypeStruct((B, PAD_OUT), jnp.float32),
        ),
        compiler_params=pltpu.CompilerParams(
            dimension_semantics=("parallel",)),
    )
    f_reduced, logits_padded = kernel(f, w1_b, b1_f, w2_b, b2_f)
    return f_reduced, logits_padded[:, :NUM_CLASSES]


if __name__ == "__main__":
    key = jax.random.PRNGKey(0)
    k_feat, k_w1, k_b1, k_w2, k_b2 = jax.random.split(key, 5)

    # Small shapes: B=2 batch, 2048-channel 4x4 pre-avgpool ResNet50 feature map.
    B, H, W = 2, 4, 4
    feat = jax.random.normal(k_feat, (B, FEAT_DIM, H, W), dtype=jnp.float32)

    # Deterministic PyTorch-style Linear init: U(-1/sqrt(fan_in), 1/sqrt(fan_in)).
    lim1 = float(1.0 / jnp.sqrt(FEAT_DIM))
    w1 = jax.random.uniform(k_w1, (FEAT_DIM, BOTTLENECK), jnp.float32, -lim1, lim1)
    b1 = jax.random.uniform(k_b1, (1, BOTTLENECK), jnp.float32, -lim1, lim1)
    lim2 = float(1.0 / jnp.sqrt(BOTTLENECK))
    w2 = jax.random.uniform(k_w2, (BOTTLENECK, NUM_CLASSES), jnp.float32, -lim2, lim2)
    b2 = jax.random.uniform(k_b2, (1, NUM_CLASSES), jnp.float32, -lim2, lim2)

    f_reduced, output = jax.block_until_ready(
        classifier_forward(feat, w1, b1, w2, b2))

    # Plain-JAX reference mirroring the kernel's math (avgpool -> bf16 matmuls
    # with f32 accumulation -> ReLU -> bf16 matmul + bias).
    f_ref = jnp.mean(feat, axis=(2, 3))
    h_ref = jnp.maximum(
        jnp.dot(f_ref.astype(jnp.bfloat16), w1.astype(jnp.bfloat16),
                preferred_element_type=jnp.float32) + b1, 0.0)
    o_ref = jnp.dot(h_ref.astype(jnp.bfloat16), w2.astype(jnp.bfloat16),
                    preferred_element_type=jnp.float32) + b2

    assert f_reduced.shape == (B, BOTTLENECK)
    assert output.shape == (B, NUM_CLASSES)
    assert bool(jnp.all(jnp.isfinite(f_reduced))) and bool(jnp.all(jnp.isfinite(output)))
    assert jnp.allclose(f_reduced, h_ref, rtol=1e-2, atol=1e-2)
    assert jnp.allclose(output, o_ref, rtol=1e-2, atol=1e-2)

    print("KERNEL_OK")
</pallas_src>

<mosaic_0001>
module attributes {stable_mosaic.version = 11 : i64} {
  func.func @_mlp_head_kernel(%arg0: i32, %arg1: memref<2x2048xbf16, #tpu.memory_space<vmem>>, %arg2: memref<2048x256xbf16, #tpu.memory_space<vmem>>, %arg3: memref<1x256xf32, #tpu.memory_space<vmem>>, %arg4: memref<256x128xbf16, #tpu.memory_space<vmem>>, %arg5: memref<1x128xf32, #tpu.memory_space<vmem>>, %arg6: memref<2x256xf32, #tpu.memory_space<vmem>>, %arg7: memref<2x128xf32, #tpu.memory_space<vmem>>) attributes {dimension_semantics = [#tpu.dimension_semantics<parallel>], iteration_bounds = array<i64: 1>, scalar_prefetch = 0 : i64, scratch_operands = 0 : i64, tpu.core_type = #tpu.core_type<tc>, window_params = [{transform_indices = @transform_0, window_bounds = array<i64: 2, 2048>}, {pipeline_mode = #tpu.pipeline_mode<synchronous>, transform_indices = @transform_1, window_bounds = array<i64: 2048, 256>}, {pipeline_mode = #tpu.pipeline_mode<synchronous>, transform_indices = @transform_2, window_bounds = array<i64: 1, 256>}, {pipeline_mode = #tpu.pipeline_mode<synchronous>, transform_indices = @transform_3, window_bounds = array<i64: 256, 128>}, {pipeline_mode = #tpu.pipeline_mode<synchronous>, transform_indices = @transform_4, window_bounds = array<i64: 1, 128>}, {transform_indices = @transform_5, window_bounds = array<i64: 2, 256>}, {transform_indices = @transform_6, window_bounds = array<i64: 2, 128>}]} {
    %c0 = arith.constant 0 : index
    %c0_0 = arith.constant 0 : index
    %0 = vector.load %arg1[%c0, %c0_0] : memref<2x2048xbf16, #tpu.memory_space<vmem>>, vector<2x2048xbf16>
    %c0_1 = arith.constant 0 : index
    %c0_2 = arith.constant 0 : index
    %1 = vector.load %arg2[%c0_1, %c0_2] : memref<2048x256xbf16, #tpu.memory_space<vmem>>, vector<2048x256xbf16>
    %cst = arith.constant dense<0.000000e+00> : vector<2x256xf32>
    %2 = tpu.matmul %0, %1, %cst {dimension_numbers = #tpu.dot_dimension_numbers<[1], [0], [0], [1], [0, 0, 1, 1], [], []>} : vector<2x2048xbf16>, vector<2048x256xbf16>, vector<2x256xf32> -> vector<2x256xf32>
    %c0_3 = arith.constant 0 : index
    %c0_4 = arith.constant 0 : index
    %3 = vector.load %arg3[%c0_3, %c0_4] : memref<1x256xf32, #tpu.memory_space<vmem>>, vector<1x256xf32>
    %4 = vector.broadcast %3 : vector<1x256xf32> to vector<2x256xf32>
    %5 = arith.addf %2, %4 : vector<2x256xf32>
    %cst_5 = arith.constant 0.000000e+00 : f32
    %6 = vector.broadcast %cst_5 : f32 to vector<2x256xf32>
    %7 = arith.maximumf %5, %6 : vector<2x256xf32>
    %c0_6 = arith.constant 0 : index
    %c0_7 = arith.constant 0 : index
    %8 = vector.load %arg6[%c0_6, %c0_7] : memref<2x256xf32, #tpu.memory_space<vmem>>, vector<2x256xf32>
    tpu.vector_store %arg6[%c0_6, %c0_7], %7 {strides = array<i32>} : memref<2x256xf32, #tpu.memory_space<vmem>>, vector<2x256xf32>,
    %9 = arith.truncf %7 : vector<2x256xf32> to vector<2x256xbf16>
    %c0_8 = arith.constant 0 : index
    %c0_9 = arith.constant 0 : index
    %10 = vector.load %arg4[%c0_8, %c0_9] : memref<256x128xbf16, #tpu.memory_space<vmem>>, vector<256x128xbf16>
    %cst_10 = arith.constant dense<0.000000e+00> : vector<2x128xf32>
    %11 = tpu.matmul %9, %10, %cst_10 {dimension_numbers = #tpu.dot_dimension_numbers<[1], [0], [0], [1], [0, 0, 1, 1], [], []>} : vector<2x256xbf16>, vector<256x128xbf16>, vector<2x128xf32> -> vector<2x128xf32>
    %c0_11 = arith.constant 0 : index
    %c0_12 = arith.constant 0 : index
    %12 = vector.load %arg5[%c0_11, %c0_12] : memref<1x128xf32, #tpu.memory_space<vmem>>, vector<1x128xf32>
    %13 = vector.broadcast %12 : vector<1x128xf32> to vector<2x128xf32>
    %14 = arith.addf %11, %13 : vector<2x128xf32>
    %c0_13 = arith.constant 0 : index
    %c0_14 = arith.constant 0 : index
    %15 = vector.load %arg7[%c0_13, %c0_14] : memref<2x128xf32, #tpu.memory_space<vmem>>, vector<2x128xf32>
    tpu.vector_store %arg7[%c0_13, %c0_14], %14 {strides = array<i32>} : memref<2x128xf32, #tpu.memory_space<vmem>>, vector<2x128xf32>,
    return
  }
  func.func @transform_0(%arg0: i32) -> (i32, i32) {
    %c0_i32 = arith.constant 0 : i32
    %c0_i32_0 = arith.constant 0 : i32
    return %arg0, %c0_i32 : i32, i32
  }
  func.func @transform_1(%arg0: i32) -> (i32, i32) {
    %c0_i32 = arith.constant 0 : i32
    %c0_i32_0 = arith.constant 0 : i32
    %c0_i32_1 = arith.constant 0 : i32
    return %c0_i32, %c0_i32_0 : i32, i32
  }
  func.func @transform_2(%arg0: i32) -> (i32, i32) {
    %c0_i32 = arith.constant 0 : i32
    %c0_i32_0 = arith.constant 0 : i32
    %c0_i32_1 = arith.constant 0 : i32
    return %c0_i32, %c0_i32_0 : i32, i32
  }
  func.func @transform_3(%arg0: i32) -> (i32, i32) {
    %c0_i32 = arith.constant 0 : i32
    %c0_i32_0 = arith.constant 0 : i32
    %c0_i32_1 = arith.constant 0 : i32
    return %c0_i32, %c0_i32_0 : i32, i32
  }
  func.func @transform_4(%arg0: i32) -> (i32, i32) {
    %c0_i32 = arith.constant 0 : i32
    %c0_i32_0 = arith.constant 0 : i32
    %c0_i32_1 = arith.constant 0 : i32
    return %c0_i32, %c0_i32_0 : i32, i32
  }
  func.func @transform_5(%arg0: i32) -> (i32, i32) {
    %c0_i32 = arith.constant 0 : i32
    %c0_i32_0 = arith.constant 0 : i32
    return %arg0, %c0_i32 : i32, i32
  }
  func.func @transform_6(%arg0: i32) -> (i32, i32) {
    %c0_i32 = arith.constant 0 : i32
    %c0_i32_0 = arith.constant 0 : i32
    return %arg0, %c0_i32 : i32, i32
  }
}

</mosaic_0001>

<bundles_post_ra>
// kernel: tpu_custom_call.1
= control target key start
LH: loop header
LB: loop body
LE: loop exit
PB: predicated region body
PF: predicated region fallthrough
CT: control target
= control target key end

     0   :  { %12 = vsyncpa [#allocation3], 0  ;;  %s3951_s0 = inlined_call_operand.hbm [shape: bf16[2,2048], index: 0, kind: input, shape index: {}]   ;;  %s3952_s1 = inlined_call_operand.hbm [shape: bf16[2048,256], index: 1, kind: input, shape index: {}]   ;;  %s3953_s2 = inlined_call_operand.hbm [shape: f32[1,256], index: 2, kind: input, shape index: {}]   ;;  %s3954_s3 = inlined_call_operand.hbm [shape: bf16[256,128], index: 3, kind: input, shape index: {}]   ;;  %s3955_s4 = inlined_call_operand.vmem [shape: f32[1,128], index: 4, kind: input, shape index: {}]   ;;  %s3956_s5 = inlined_call_operand.hbm [shape: f32[2,256], index: 5, kind: output, shape index: {0}]   ;;  %s3957_s6 = inlined_call_operand.hbm [shape: f32[2,128], index: 6, kind: output, shape index: {1}]  }
   0x1   :  { %13 = vsyncpa [#allocation6], 0 }
   0x2   :  { %14 = vsyncpa [#allocation9], 0 }
   0x3   :  { %15 = vsyncpa [#allocation4], 0  ;;  %s32_s23 = sshll.u32 %s3952_s1, 4  ;;  %s33_s23 = int_to_ptr.hbm [resolvable:$true] %s32_s23 }
   0x4   :  { %16 = vsyncpa [#allocation12], 0  ;;  %s3817_s24 = smov [#allocation5]   ;;  %s22_s28 = sshll.u32 %s3951_s0, 4  ;;  %s23_s28 = int_to_ptr.hbm [resolvable:$true] %s22_s28 }
   0x5   :  { %s34_s25 = sshll.u32 %s3817_s24, 4  ;;  %s3818_s29 = smov 128   ;;  %s35_s25 = int_to_ptr.vmem [resolvable:$true] %s34_s25 }
   0x6   :  { %s3819_s30 = smov 8   ;;  %s3820_s7 = smov [#allocation2]  }
   0x7   :  { %40 = dma.hbm_to_vmem [thread:$0]  %s33_s23, 32768, %s35_s25, [#allocation6], %s3818_s29, %s3818_s29, %s3819_s30  }
   0x8   :  { %s24_s8 = sshll.u32 %s3820_s7, 4  ;;  %s46_s11 = sshll.u32 %s3953_s2, 4  ;;  %s25_s8 = int_to_ptr.vmem [resolvable:$true] %s24_s8  ;;  %s47_s11 = int_to_ptr.hbm [resolvable:$true] %s46_s11 }
   0x9   :  { %27 = dma.hbm_to_vmem [thread:$0]  %s23_s28, 256, %s25_s8, [#allocation3]  }
   0xa   :  { %s56_s13 = sshll.u32 %s3954_s3, 4  ;;  %s3821_s14 = smov [#allocation7]   ;;  %s57_s13 = int_to_ptr.hbm [resolvable:$true] %s56_s13 }
   0xb   :  { %s48_s15 = sshll.u32 %s3821_s14, 4  ;;  %s3822_s0 = smov [#allocation8]   ;;  %s49_s15 = int_to_ptr.vmem [resolvable:$true] %s48_s15 }
   0xc   :  { %51 = dma.hbm_to_vmem [thread:$0]  %s47_s11, 32, %s49_s15, [#allocation6]  }
   0xd   :  { %s58_s16 = sshll.u32 %s3822_s0, 4  ;;  %s3823_s17 = smov 64   ;;  %s59_s16 = int_to_ptr.vmem [resolvable:$true] %s58_s16 }
   0xe   :  { %s3824_s18 = smov 4  }
   0xf   :  { %64 = dma.hbm_to_vmem [thread:$0]  %s57_s13, 2048, %s59_s16, [#allocation9], %s3823_s17, %s3823_s17, %s3824_s18  }
  0x10   :  { %3807 = dma.done.wait [#allocation3], 256  }
  0x11   :  { %3808 = vsyncadd [#allocation3], 4294967040 }
  0x12   :  { %3809 = dma.done.wait [#allocation6], 32800  }
  0x13   :  { %3810 = vsyncadd [#allocation6], 4294934496 }
  0x14   :  { %3811 = dma.done.wait [#allocation9], 2048  }
  0x15   :  { %3812 = vsyncadd [#allocation9], 4294965248  ;;  %v2342_v0 = vld [vmem:[#allocation5 + $0x70] sm:$0xf]  ;;  %v3387_v1 = vld [vmem:[#allocation5 + $0x74] sm:$0xf0] }
  0x16   :  { %v2406_v2 = vld [vmem:[#allocation5 + $0xf0] sm:$0xf]  ;;  %v2343_v3 = vor.u32 %v3387_v1, %v2342_v0  ;;  %v3403_v4 = vld [vmem:[#allocation5 + $0xf4] sm:$0xf0]  ;;  %v2334_v11 = vld [vmem:[#allocation5 + $0x60] sm:$0xf] }
  0x17   :  { %v2470_v5 = vld [vmem:[#allocation5 + $0x170] sm:$0xf]  ;;  %v3419_v6 = vld [vmem:[#allocation5 + $0x174] sm:$0xf0]  ;;  %v2407_v7 = vor.u32 %v3403_v4, %v2406_v2  ;;  %v3385_v13 = vld [vmem:[#allocation5 + $0x64] sm:$0xf0] }
  0x18   :  { %v2471_v8 = vor.u32 %v3419_v6, %v2470_v5  ;;  %v2534_v9 = vld [vmem:[#allocation5 + $0x1f0] sm:$0xf]  ;;  %v3435_v10 = vld [vmem:[#allocation5 + $0x1f4] sm:$0xf0]  ;;  %1663 = vmatpush.bf16.msra.mxu0 %v2343_v3  ;;  %v2398_v14 = vld [vmem:[#allocation5 + $0xe0] sm:$0xf]  ;;  %v2335_v16 = vor.u32 %v3385_v13, %v2334_v11 }
  0x19   :  { %v2535_v12 = vor.u32 %v3435_v10, %v2534_v9  ;;  %v3401_v15 = vld [vmem:[#allocation5 + $0xe4] sm:$0xf0]  ;;  %1676 = vmatpush.bf16.msra.mxu1 %v2407_v7  ;;  %v2462_v18 = vld [vmem:[#allocation5 + $0x160] sm:$0xf]  ;;  %v2326_v23 = vld [vmem:[#allocation5 + $0x50] sm:$0xf] }
  0x1a   :  { %1689 = vmatpush.bf16.msra.mxu2 %v2471_v8  ;;  %v2399_v17 = vor.u32 %v3401_v15, %v2398_v14  ;;  %v3417_v19 = vld [vmem:[#allocation5 + $0x164] sm:$0xf0]  ;;  %v2526_v20 = vld [vmem:[#allocation5 + $0x1e0] sm:$0xf]  ;;  %v3383_v24 = vld [vmem:[#allocation5 + $0x54] sm:$0xf0] }
  0x1b   :  { %1702 = vmatpush.bf16.msra.mxu3 %v2535_v12  ;;  %v2463_v21 = vor.u32 %v3417_v19, %v2462_v18  ;;  %v3433_v22 = vld [vmem:[#allocation5 + $0x1e4] sm:$0xf0]  ;;  %v2390_v26 = vld [vmem:[#allocation5 + $0xd0] sm:$0xf]  ;;  %v3399_v27 = vld [vmem:[#allocation5 + $0xd4] sm:$0xf0]  ;;  %v2327_v29 = vor.u32 %v3383_v24, %v2326_v23 }
  0x1c   :  { %v2527_v25 = vor.u32 %v3433_v22, %v2526_v20  ;;  %v2454_v28 = vld [vmem:[#allocation5 + $0x150] sm:$0xf]  ;;  %1664 = vmatpush.bf16.msra.mxu0 %v2335_v16  ;;  %v3415_v30 = vld [vmem:[#allocation5 + $0x154] sm:$0xf0]  ;;  %v2391_v33 = vor.u32 %v3399_v27, %v2390_v26  ;;  %v2318_v35 = vld [vmem:[#allocation5 + $0x40] sm:$0xf] }
  0x1d   :  { %v2518_v31 = vld [vmem:[#allocation5 + $0x1d0] sm:$0xf]  ;;  %v3431_v32 = vld [vmem:[#allocation5 + $0x1d4] sm:$0xf0]  ;;  %1677 = vmatpush.bf16.msra.mxu1 %v2399_v17  ;;  %v2455_v34 = vor.u32 %v3415_v30, %v2454_v28  ;;  %v3381_v36 = vld [vmem:[#allocation5 + $0x44] sm:$0xf0] }
  0x1e   :  { %1690 = vmatpush.bf16.msra.mxu2 %v2463_v21  ;;  %v2382_v37 = vld [vmem:[#allocation5 + $0xc0] sm:$0xf]  ;;  %v2519_v38 = vor.u32 %v3431_v32, %v2518_v31  ;;  %v3397_v39 = vld [vmem:[#allocation5 + $0xc4] sm:$0xf0]  ;;  %v2319_v44 = vor.u32 %v3381_v36, %v2318_v35  ;;  %v2310_v47 = vld [vmem:[#allocation5 + $0x30] sm:$0xf] }
  0x1f   :  { %1703 = vmatpush.bf16.msra.mxu3 %v2527_v25  ;;  %v2446_v40 = vld [vmem:[#allocation5 + $0x140] sm:$0xf]  ;;  %v3413_v41 = vld [vmem:[#allocation5 + $0x144] sm:$0xf0]  ;;  %v2383_v45 = vor.u32 %v3397_v39, %v2382_v37  ;;  %v3379_v48 = vld [vmem:[#allocation5 + $0x34] sm:$0xf0] }
  0x20   :  { %v2510_v42 = vld [vmem:[#allocation5 + $0x1c0] sm:$0xf]  ;;  %v3429_v43 = vld [vmem:[#allocation5 + $0x1c4] sm:$0xf0]  ;;  %1665 = vmatpush.bf16.msra.mxu0 %v2327_v29  ;;  %v2447_v46 = vor.u32 %v3413_v41, %v2446_v40  ;;  %v2374_v49 = vld [vmem:[#allocation5 + $0xb0] sm:$0xf]  ;;  %v2311_v56 = vor.u32 %v3379_v48, %v2310_v47 }
  0x21   :  { %1678 = vmatpush.bf16.msra.mxu1 %v2391_v33  ;;  %v2511_v50 = vor.u32 %v3429_v43, %v2510_v42  ;;  %v3395_v51 = vld [vmem:[#allocation5 + $0xb4] sm:$0xf0]  ;;  %v2438_v52 = vld [vmem:[#allocation5 + $0x130] sm:$0xf]  ;;  %v2302_v59 = vld [vmem:[#allocation5 + $0x20] sm:$0xf] }
  0x22   :  { %1691 = vmatpush.bf16.msra.mxu2 %v2455_v34  ;;  %v3411_v53 = vld [vmem:[#allocation5 + $0x134] sm:$0xf0]  ;;  %v2502_v54 = vld [vmem:[#allocation5 + $0x1b0] sm:$0xf]  ;;  %v2375_v57 = vor.u32 %v3395_v51, %v2374_v49  ;;  %v3377_v60 = vld [vmem:[#allocation5 + $0x24] sm:$0xf0] }
  0x23   :  { %1704 = vmatpush.bf16.msra.mxu3 %v2519_v38  ;;  %v3427_v55 = vld [vmem:[#allocation5 + $0x1b4] sm:$0xf0]  ;;  %v2439_v58 = vor.u32 %v3411_v53, %v2438_v52  ;;  %v2366_v61 = vld [vmem:[#allocation5 + $0xa0] sm:$0xf]  ;;  %v3393_v63 = vld [vmem:[#allocation5 + $0xa4] sm:$0xf0]  ;;  %v2303_v4 = vor.u32 %v3377_v60, %v2302_v59 }
  0x24   :  { %1666 = vmatpush.bf16.msra.mxu0 %v2319_v44  ;;  %v2503_v62 = vor.u32 %v3427_v55, %v2502_v54  ;;  %v2430_v0 = vld [vmem:[#allocation5 + $0x120] sm:$0xf]  ;;  %v3409_v1 = vld [vmem:[#allocation5 + $0x124] sm:$0xf0]  ;;  %v2367_v5 = vor.u32 %v3393_v63, %v2366_v61  ;;  %v2294_v7 = vld [vmem:[#allocation5 + $0x10] sm:$0xf] }
  0x25   :  { %1679 = vmatpush.bf16.msra.mxu1 %v2383_v45  ;;  %v2494_v2 = vld [vmem:[#allocation5 + $0x1a0] sm:$0xf]  ;;  %v3425_v3 = vld [vmem:[#allocation5 + $0x1a4] sm:$0xf0]  ;;  %v2431_v6 = vor.u32 %v3409_v1, %v2430_v0  ;;  %v3375_v8 = vld [vmem:[#allocation5 + $0x14] sm:$0xf0] }
  0x26   :  { %1692 = vmatpush.bf16.msra.mxu2 %v2447_v46  ;;  %v2358_v9 = vld [vmem:[#allocation5 + $0x90] sm:$0xf]  ;;  %v2495_v10 = vor.u32 %v3425_v3, %v2494_v2  ;;  %v3391_v11 = vld [vmem:[#allocation5 + $0x94] sm:$0xf0]  ;;  %v2295_v16 = vor.u32 %v3375_v8, %v2294_v7  ;;  %v2286_v17 = vld [vmem:[#allocation5] sm:$0xf] }
  0x27   :  { %1705 = vmatpush.bf16.msra.mxu3 %v2511_v50  ;;  %v2422_v12 = vld [vmem:[#allocation5 + $0x110] sm:$0xf]  ;;  %v3407_v13 = vld [vmem:[#allocation5 + $0x114] sm:$0xf0]  ;;  %v3373_v18 = vld [vmem:[#allocation5 + $0x4] sm:$0xf0]  ;;  %v2359_v19 = vor.u32 %v3391_v11, %v2358_v9 }
  0x28   :  { %1667 = vmatpush.bf16.msra.mxu0 %v2311_v56  ;;  %v2486_v14 = vld [vmem:[#allocation5 + $0x190] sm:$0xf]  ;;  %v3423_v15 = vld [vmem:[#allocation5 + $0x194] sm:$0xf0]  ;;  %v2423_v20 = vor.u32 %v3407_v13, %v2422_v12  ;;  %v2350_v21 = vld [vmem:[#allocation5 + $0x80] sm:$0xf]  ;;  %v2287_v31 = vor.u32 %v3373_v18, %v2286_v17 }
  0x29   :  { %1680 = vmatpush.bf16.msra.mxu1 %v2375_v57  ;;  %v3389_v22 = vld [vmem:[#allocation5 + $0x84] sm:$0xf0]  ;;  %v2414_v23 = vld [vmem:[#allocation5 + $0x100] sm:$0xf]  ;;  %v2487_v24 = vor.u32 %v3423_v15, %v2486_v14  ;;  %v2598_v28 = vld [vmem:[#allocation5 + $0x270] sm:$0xf] }
  0x2a   :  { %1693 = vmatpush.bf16.msra.mxu2 %v2439_v58  ;;  %v3405_v25 = vld [vmem:[#allocation5 + $0x104] sm:$0xf0]  ;;  %v2478_v26 = vld [vmem:[#allocation5 + $0x180] sm:$0xf]  ;;  %v3451_v29 = vld [vmem:[#allocation5 + $0x274] sm:$0xf0]  ;;  %v2351_v35 = vor.u32 %v3389_v22, %v2350_v21 }
  0x2b   :  { %1706 = vmatpush.bf16.msra.mxu3 %v2503_v62  ;;  %v3421_v27 = vld [vmem:[#allocation5 + $0x184] sm:$0xf0]  ;;  %v2662_v30 = vld [vmem:[#allocation5 + $0x2f0] sm:$0xf]  ;;  %v3467_v32 = vld [vmem:[#allocation5 + $0x2f4] sm:$0xf0]  ;;  %v2415_v36 = vor.u32 %v3405_v25, %v2414_v23  ;;  %v2599_v40 = vor.u32 %v3451_v29, %v2598_v28 }
  0x2c   :  { %1668 = vmatpush.bf16.msra.mxu0 %v2303_v4  ;;  %v2726_v33 = vld [vmem:[#allocation5 + $0x370] sm:$0xf]  ;;  %v3483_v34 = vld [vmem:[#allocation5 + $0x374] sm:$0xf0]  ;;  %v2479_v39 = vor.u32 %v3421_v27, %v2478_v26  ;;  %v2663_v41 = vor.u32 %v3467_v32, %v2662_v30  ;;  %v2590_v43 = vld [vmem:[#allocation5 + $0x260] sm:$0xf] }
  0x2d   :  { %1681 = vmatpush.bf16.msra.mxu1 %v2367_v5  ;;  %v2790_v37 = vld [vmem:[#allocation5 + $0x3f0] sm:$0xf]  ;;  %v3499_v38 = vld [vmem:[#allocation5 + $0x3f4] sm:$0xf0]  ;;  %v2727_v42 = vor.u32 %v3483_v34, %v2726_v33  ;;  %v3449_v44 = vld [vmem:[#allocation5 + $0x264] sm:$0xf0] }
  0x2e   :  { %1694 = vmatpush.bf16.msra.mxu2 %v2431_v6  ;;  %v2654_v45 = vld [vmem:[#allocation5 + $0x2e0] sm:$0xf]  ;;  %v2791_v46 = vor.u32 %v3499_v38, %v2790_v37  ;;  %v3465_v47 = vld [vmem:[#allocation5 + $0x2e4] sm:$0xf0]  ;;  %v2591_v52 = vor.u32 %v3449_v44, %v2590_v43  ;;  %v2582_v55 = vld [vmem:[#allocation5 + $0x250] sm:$0xf] }
  0x2f   :  { %1707 = vmatpush.bf16.msra.mxu3 %v2495_v10  ;;  %v2718_v48 = vld [vmem:[#allocation5 + $0x360] sm:$0xf]  ;;  %v3481_v49 = vld [vmem:[#allocation5 + $0x364] sm:$0xf0]  ;;  %v2655_v53 = vor.u32 %v3465_v47, %v2654_v45  ;;  %v3447_v56 = vld [vmem:[#allocation5 + $0x254] sm:$0xf0] }
  0x30   :  { %1669 = vmatpush.bf16.msra.mxu0 %v2295_v16  ;;  %v2782_v50 = vld [vmem:[#allocation5 + $0x3e0] sm:$0xf]  ;;  %v3497_v51 = vld [vmem:[#allocation5 + $0x3e4] sm:$0xf0]  ;;  %v2719_v54 = vor.u32 %v3481_v49, %v2718_v48  ;;  %v2646_v57 = vld [vmem:[#allocation5 + $0x2d0] sm:$0xf]  ;;  %v2583_v0 = vor.u32 %v3447_v56, %v2582_v55 }
  0x31   :  { %1682 = vmatpush.bf16.msra.mxu1 %v2359_v19  ;;  %v2783_v58 = vor.u32 %v3497_v51, %v2782_v50  ;;  %v3463_v59 = vld [vmem:[#allocation5 + $0x2d4] sm:$0xf0]  ;;  %v2710_v60 = vld [vmem:[#allocation5 + $0x350] sm:$0xf]  ;;  %v2574_v1 = vld [vmem:[#allocation5 + $0x240] sm:$0xf] }
  0x32   :  { %1695 = vmatpush.bf16.msra.mxu2 %v2423_v20  ;;  %v3479_v61 = vld [vmem:[#allocation5 + $0x354] sm:$0xf0]  ;;  %v2774_v62 = vld [vmem:[#allocation5 + $0x3d0] sm:$0xf]  ;;  %v2647_v3 = vor.u32 %v3463_v59, %v2646_v57  ;;  %v3445_v5 = vld [vmem:[#allocation5 + $0x244] sm:$0xf0] }
  0x33   :  { %1708 = vmatpush.bf16.msra.mxu3 %v2487_v24  ;;  %v3495_v63 = vld [vmem:[#allocation5 + $0x3d4] sm:$0xf0]  ;;  %v83_v2 = vld [vmem:[#allocation2] sm:$0xff]  ;;  %v2711_v4 = vor.u32 %v3479_v61, %v2710_v60  ;;  %v2638_v6 = vld [vmem:[#allocation5 + $0x2c0] sm:$0xf]  ;;  %v2575_v13 = vor.u32 %v3445_v5, %v2574_v1  ;;  %vm2084_vm0 = vcmask 1041408  }
  0x34   :  { %1670 = vmatpush.bf16.msra.mxu0 %v2287_v31  ;;  %348 = vst [vmem:[#allocation1] ss:$9 sm:$0xff] %v83_v2  ;;  %v2775_v7 = vor.u32 %v3495_v63, %v2774_v62  ;;  %v3461_v8 = vld [vmem:[#allocation5 + $0x2c4] sm:$0xf0]  ;;  %v2702_v9 = vld [vmem:[#allocation5 + $0x340] sm:$0xf] }
  0x35   :  { %1683 = vmatpush.bf16.msra.mxu1 %v2351_v35  ;;  %v3477_v10 = vld [vmem:[#allocation5 + $0x344] sm:$0xf0]  ;;  %v2766_v11 = vld [vmem:[#allocation5 + $0x3c0] sm:$0xf]  ;;  %v2639_v14 = vor.u32 %v3461_v8, %v2638_v6  ;;  %v2566_v16 = vld [vmem:[#allocation5 + $0x230] sm:$0xf] }
  0x36   :  { %1696 = vmatpush.bf16.msra.mxu2 %v2415_v36  ;;  %v3493_v12 = vld [vmem:[#allocation5 + $0x3c4] sm:$0xf0]  ;;  %v2703_v15 = vor.u32 %v3477_v10, %v2702_v9  ;;  %v3443_v17 = vld [vmem:[#allocation5 + $0x234] sm:$0xf0]  ;;  %v2630_v18 = vld [vmem:[#allocation5 + $0x2b0] sm:$0xf] }
  0x37   :  { %1709 = vmatpush.bf16.msra.mxu3 %v2479_v39  ;;  %v2767_v19 = vor.u32 %v3493_v12, %v2766_v11  ;;  %v3459_v20 = vld [vmem:[#allocation5 + $0x2b4] sm:$0xf0]  ;;  %v2694_v21 = vld [vmem:[#allocation5 + $0x330] sm:$0xf]  ;;  %v2558_v25 = vld [vmem:[#allocation5 + $0x220] sm:$0xf]  ;;  %v2567_v26 = vor.u32 %v3443_v17, %v2566_v16 }
  0x38   :  { %1715 = vmatpush.bf16.msrb.mxu0 %v2599_v40  ;;  %v3475_v22 = vld [vmem:[#allocation5 + $0x334] sm:$0xf0]  ;;  %v2758_v23 = vld [vmem:[#allocation5 + $0x3b0] sm:$0xf]  ;;  %v2631_v30 = vor.u32 %v3459_v20, %v2630_v18  ;;  %v3441_v32 = vld [vmem:[#allocation5 + $0x224] sm:$0xf0] }
  0x39   :  { %1728 = vmatpush.bf16.msrb.mxu1 %v2663_v41  ;;  %v3491_v24 = vld [vmem:[#allocation5 + $0x3b4] sm:$0xf0]  ;;  %v2695_v31 = vor.u32 %v3475_v22, %v2694_v21  ;;  %v2622_v33 = vld [vmem:[#allocation5 + $0x2a0] sm:$0xf]  ;;  %v3457_v36 = vld [vmem:[#allocation5 + $0x2a4] sm:$0xf0]  ;;  %v2559_v41 = vor.u32 %v3441_v32, %v2558_v25 }
  0x3a   :  { %1741 = vmatpush.bf16.msrb.mxu2 %v2727_v42  ;;  %v2759_v35 = vor.u32 %v3491_v24, %v2758_v23  ;;  %v2686_v37 = vld [vmem:[#allocation5 + $0x320] sm:$0xf]  ;;  %v3473_v38 = vld [vmem:[#allocation5 + $0x324] sm:$0xf0]  ;;  %v2550_v42 = vld [vmem:[#allocation5 + $0x210] sm:$0xf]  ;;  %v2623_v43 = vor.u32 %v3457_v36, %v2622_v33 }
  0x3b   :  { %1754 = vmatpush.bf16.msrb.mxu3 %v2791_v46  ;;  %v3874_v27 = vld [vmem:[#allocation1 + $0x12] sm:$0xff]  ;;  %v3876_v28 = vld [vmem:[#allocation1] sm:$0xff]  ;;  %v3880_v34 = vld [vmem:[#allocation1 + $0x9] sm:$0xff]  ;;  %v2687_v44 = vor.u32 %v3473_v38, %v2686_v37  ;;  %s3825_s2 = smov [#allocation10]   ;;  %s2256_s21 = sshll.u32 %s3956_s5, 4  ;;  %s2257_s21 = int_to_ptr.hbm [resolvable:$true] %s2256_s21 }
  0x3c   :  { %1716 = vmatpush.bf16.msrb.mxu0 %v2591_v52  ;;  %v3878_v29 = vld [vmem:[#allocation1 + $0x1b] sm:$0xff]  ;;  %1697 = vmatmul.bf16.vlgmr.msra.gmra.mxu2 %v3874_v27  ;;  %v3439_v45 = vld [vmem:[#allocation5 + $0x214] sm:$0xf0]  ;;  %v2614_v46 = vld [vmem:[#allocation5 + $0x290] sm:$0xf]  ;;  %s2254_s3 = sshll.u32 %s3825_s2, 4  ;;  %s2255_s3 = int_to_ptr.vmem [resolvable:$true] %s2254_s3 }
  0x3d   :  { %1729 = vmatpush.bf16.msrb.mxu1 %v2655_v53  ;;  %v2750_v39 = vld [vmem:[#allocation5 + $0x3a0] sm:$0xf]  ;;  %v3489_v40 = vld [vmem:[#allocation5 + $0x3a4] sm:$0xf0]  ;;  %1671 = vmatmul.bf16.vlgmr.msra.gmra.mxu0 %v3876_v28  ;;  %v3455_v47 = vld [vmem:[#allocation5 + $0x294] sm:$0xf0]  ;;  %v2551_v55 = vor.u32 %v3439_v45, %v2550_v42 }
  0x3e   :  { %1742 = vmatpush.bf16.msrb.mxu2 %v2719_v54  ;;  %1710 = vmatmul.bf16.vlgmr.msra.gmra.mxu3 %v3878_v29  ;;  %v2751_v48 = vor.u32 %v3489_v40, %v2750_v39  ;;  %v2678_v49 = vld [vmem:[#allocation5 + $0x310] sm:$0xf]  ;;  %v3471_v50 = vld [vmem:[#allocation5 + $0x314] sm:$0xf0]  ;;  %v2542_v53 = vld [vmem:[#allocation5 + $0x200] sm:$0xf]  ;;  %v2615_v62 = vor.u32 %v3455_v47, %v2614_v46 }
  0x3f   :  { %1755 = vmatpush.bf16.msrb.mxu3 %v2783_v58  ;;  %1684 = vmatmul.bf16.vlgmr.msra.gmra.mxu1 %v3880_v34  ;;  %v2742_v51 = vld [vmem:[#allocation5 + $0x390] sm:$0xf]  ;;  %v3487_v52 = vld [vmem:[#allocation5 + $0x394] sm:$0xf0]  ;;  %v3437_v54 = vld [vmem:[#allocation5 + $0x204] sm:$0xf0]  ;;  %v2679_v63 = vor.u32 %v3471_v50, %v2678_v49 }
  0x40   :  { %1717 = vmatpush.bf16.msrb.mxu0 %v2583_v0  ;;  %v2606_v56 = vld [vmem:[#allocation5 + $0x280] sm:$0xf]  ;;  %v3453_v57 = vld [vmem:[#allocation5 + $0x284] sm:$0xf0]  ;;  %v84_v61 = vld [vmem:[#allocation2 + $0x8] sm:$0xff]  ;;  %v2543_v9 = vor.u32 %v3437_v54, %v2542_v53  ;;  %s3826_s24 = smov [#allocation11]  }
  0x41   :  { %1730 = vmatpush.bf16.msrb.mxu1 %v2647_v3  ;;  %v2670_v58 = vld [vmem:[#allocation5 + $0x300] sm:$0xf]  ;;  %v3469_v59 = vld [vmem:[#allocation5 + $0x304] sm:$0xf0]  ;;  %v3888_v0 = vld [vmem:[#allocation1 + $0x24] sm:$0xff]  ;;  %v2743_v3 = vor.u32 %v3487_v52, %v2742_v51  ;;  %s2265_s25 = sshll.u32 %s3826_s24, 4  ;;  %s2266_s25 = int_to_ptr.vmem [resolvable:$true] %s2265_s25 }
  0x42   :  { %1743 = vmatpush.bf16.msrb.mxu2 %v2711_v4  ;;  %v3886_v60 = vld [vmem:[#allocation1 + $0x36] sm:$0xff]  ;;  %v3890_v1 = vld [vmem:[#allocation1 + $0x3f] sm:$0xff]  ;;  %v3892_v2 = vld [vmem:[#allocation1 + $0x2d] sm:$0xff]  ;;  %s2267_s28 = sshll.u32 %s3957_s6, 4  ;;  %s2268_s28 = int_to_ptr.hbm [resolvable:$true] %s2267_s28 }
  0x43   :  { %1756 = vmatpush.bf16.msrb.mxu3 %v2775_v7  ;;  %v2734_v4 = vld [vmem:[#allocation5 + $0x380] sm:$0xf]  ;;  %v3485_v5 = vld [vmem:[#allocation5 + $0x384] sm:$0xf0]  ;;  %358 = vst [vmem:[#allocation1] ss:$9 sm:$0xff] %v84_v61 }
  0x44   :  { %1718 = vmatpush.bf16.msrb.mxu0 %v2575_v13  ;;  %v2854_v6 = vld [vmem:[#allocation5 + $0x470] sm:$0xf]  ;;  %v3515_v7 = vld [vmem:[#allocation5 + $0x474] sm:$0xf0]  ;;  %v2607_v13 = vor.u32 %v3453_v57, %v2606_v56  ;;  %v2735_v17 = vor.u32 %v3485_v5, %v2734_v4  ;;  %v2846_v21 = vld [vmem:[#allocation5 + $0x460] sm:$0xf] }
  0x45   :  { %1731 = vmatpush.bf16.msrb.mxu1 %v2639_v14  ;;  %v2918_v8 = vld [vmem:[#allocation5 + $0x4f0] sm:$0xf]  ;;  %v3531_v10 = vld [vmem:[#allocation5 + $0x4f4] sm:$0xf0]  ;;  %v2671_v14 = vor.u32 %v3469_v59, %v2670_v58  ;;  %v2855_v18 = vor.u32 %v3515_v7, %v2854_v6  ;;  %v3513_v22 = vld [vmem:[#allocation5 + $0x464] sm:$0xf0] }
  0x46   :  { %1744 = vmatpush.bf16.msrb.mxu2 %v2703_v15  ;;  %v2982_v11 = vld [vmem:[#allocation5 + $0x570] sm:$0xf]  ;;  %v3547_v12 = vld [vmem:[#allocation5 + $0x574] sm:$0xf0]  ;;  %v2910_v23 = vld [vmem:[#allocation5 + $0x4e0] sm:$0xf]  ;;  %v2847_v33 = vor.u32 %v3513_v22, %v2846_v21 }
  0x47   :  { %1757 = vmatpush.bf16.msrb.mxu3 %v2767_v19  ;;  %v3046_v15 = vld [vmem:[#allocation5 + $0x5f0] sm:$0xf]  ;;  %v3563_v16 = vld [vmem:[#allocation5 + $0x5f4] sm:$0xf0]  ;;  %v2919_v19 = vor.u32 %v3531_v10, %v2918_v8  ;;  %v2983_v20 = vor.u32 %v3547_v12, %v2982_v11  ;;  %v3529_v25 = vld [vmem:[#allocation5 + $0x4e4] sm:$0xf0] }
  0x48   :  { %1719 = vmatpush.bf16.msrb.mxu0 %v2567_v26  ;;  %v3047_v24 = vor.u32 %v3563_v16, %v3046_v15  ;;  %v2974_v26 = vld [vmem:[#allocation5 + $0x560] sm:$0xf]  ;;  %v3561_v32 = vld [vmem:[#allocation5 + $0x5e4] sm:$0xf0]  ;;  %v2838_v37 = vld [vmem:[#allocation5 + $0x450] sm:$0xf] }
  0x49   :  { %1732 = vmatpush.bf16.msrb.mxu1 %v2631_v30  ;;  %v3545_v30 = vld [vmem:[#allocation5 + $0x564] sm:$0xf0]  ;;  %v3511_v38 = vld [vmem:[#allocation5 + $0x454] sm:$0xf0]  ;;  %v2902_v39 = vld [vmem:[#allocation5 + $0x4d0] sm:$0xf] }
  0x4a   :  { %1745 = vmatpush.bf16.msrb.mxu2 %v2695_v31  ;;  %v3038_v31 = vld [vmem:[#allocation5 + $0x5e0] sm:$0xf]  ;;  %v2975_v36 = vor.u32 %v3545_v30, %v2974_v26  ;;  %v2966_v42 = vld [vmem:[#allocation5 + $0x550] sm:$0xf]  ;;  %v3559_v45 = vld [vmem:[#allocation5 + $0x5d4] sm:$0xf0]  ;;  %v2839_v46 = vor.u32 %v3511_v38, %v2838_v37 }
  0x4b   :  { %1758 = vmatpush.bf16.msrb.mxu3 %v2759_v35  ;;  %v2911_v35 = vor.u32 %v3529_v25, %v2910_v23  ;;  %v3039_v40 = vor.u32 %v3561_v32, %v3038_v31  ;;  %v2830_v49 = vld [vmem:[#allocation5 + $0x440] sm:$0xf]  ;;  %v3509_v50 = vld [vmem:[#allocation5 + $0x444] sm:$0xf0]  ;;  %v3523_v5 = vld [vmem:[#allocation5 + $0x4b4] sm:$0xf0] }
  0x4c   :  { %1720 = vmatpush.bf16.msrb.mxu0 %v2559_v41  ;;  %v3527_v41 = vld [vmem:[#allocation5 + $0x4d4] sm:$0xf0]  ;;  %v2894_v51 = vld [vmem:[#allocation5 + $0x4c0] sm:$0xf]  ;;  %v3525_v53 = vld [vmem:[#allocation5 + $0x4c4] sm:$0xf0]  ;;  %v2831_v58 = vor.u32 %v3509_v50, %v2830_v49 }
  0x4d   :  { %1733 = vmatpush.bf16.msrb.mxu1 %v2623_v43  ;;  %v3543_v43 = vld [vmem:[#allocation5 + $0x554] sm:$0xf0]  ;;  %v2903_v47 = vor.u32 %v3527_v41, %v2902_v39  ;;  %v2958_v54 = vld [vmem:[#allocation5 + $0x540] sm:$0xf]  ;;  %v3557_v57 = vld [vmem:[#allocation5 + $0x5c4] sm:$0xf0]  ;;  %v2895_v59 = vor.u32 %v3525_v53, %v2894_v51 }
  0x4e   :  { %1746 = vmatpush.bf16.msrb.mxu2 %v2687_v44  ;;  %v3030_v44 = vld [vmem:[#allocation5 + $0x5d0] sm:$0xf]  ;;  %v3022_v56 = vld [vmem:[#allocation5 + $0x5c0] sm:$0xf]  ;;  %v3539_v7 = vld [vmem:[#allocation5 + $0x534] sm:$0xf0] }
  0x4f   :  { %1759 = vmatpush.bf16.msrb.mxu3 %v2751_v48  ;;  %v2967_v48 = vor.u32 %v3543_v43, %v2966_v42  ;;  %v3031_v52 = vor.u32 %v3559_v45, %v3030_v44  ;;  %v3023_v4 = vor.u32 %v3557_v57, %v3022_v56  ;;  %v2950_v6 = vld [vmem:[#allocation5 + $0x530] sm:$0xf]  ;;  %v2878_v15 = vld [vmem:[#allocation5 + $0x4a0] sm:$0xf]  ;;  %v3553_v21 = vld [vmem:[#allocation5 + $0x5a4] sm:$0xf0] }
  0x50   :  { %1721 = vmatpush.bf16.msrb.mxu0 %v2551_v55  ;;  %v3541_v55 = vld [vmem:[#allocation5 + $0x544] sm:$0xf0]  ;;  %v3014_v8 = vld [vmem:[#allocation5 + $0x5b0] sm:$0xf]  ;;  %v2951_v12 = vor.u32 %v3539_v7, %v2950_v6  ;;  %v3503_v26 = vld [vmem:[#allocation5 + $0x414] sm:$0xf0] }
  0x51   :  { %1734 = vmatpush.bf16.msrb.mxu1 %v2615_v62  ;;  %v2959_v61 = vor.u32 %v3541_v55, %v2958_v54  ;;  %v2822_v62 = vld [vmem:[#allocation5 + $0x430] sm:$0xf]  ;;  %v3519_v32 = vld [vmem:[#allocation5 + $0x494] sm:$0xf0]  ;;  %v2798_v39 = vld [vmem:[#allocation5 + $0x400] sm:$0xf] }
  0x52   :  { %1747 = vmatpush.bf16.msrb.mxu2 %v2679_v63  ;;  %v3507_v63 = vld [vmem:[#allocation5 + $0x434] sm:$0xf0]  ;;  %v2806_v25 = vld [vmem:[#allocation5 + $0x410] sm:$0xf]  ;;  %v2862_v43 = vld [vmem:[#allocation5 + $0x480] sm:$0xf] }
  0x53   :  { %1760 = vmatpush.bf16.msrb.mxu3 %v2743_v3  ;;  %v2886_v3 = vld [vmem:[#allocation5 + $0x4b0] sm:$0xf]  ;;  %v2823_v10 = vor.u32 %v3507_v63, %v2822_v62  ;;  %v3551_v37 = vld [vmem:[#allocation5 + $0x594] sm:$0xf0]  ;;  %v2807_v38 = vor.u32 %v3503_v26, %v2806_v25  ;;  %v3517_v44 = vld [vmem:[#allocation5 + $0x484] sm:$0xf0] }
  0x54   :  { %1722 = vmatpush.bf16.msrb.mxu0 %v2543_v9  ;;  %v3555_v9 = vld [vmem:[#allocation5 + $0x5b4] sm:$0xf0]  ;;  %v2887_v11 = vor.u32 %v3523_v5, %v2886_v3  ;;  %v2870_v30 = vld [vmem:[#allocation5 + $0x490] sm:$0xf]  ;;  %v2926_v45 = vld [vmem:[#allocation5 + $0x500] sm:$0xf]  ;;  %v2863_v57 = vor.u32 %v3517_v44, %v2862_v43 }
  0x55   :  { %1735 = vmatpush.bf16.msrb.mxu1 %v2607_v13  ;;  %v2814_v13 = vld [vmem:[#allocation5 + $0x420] sm:$0xf]  ;;  %v3015_v16 = vor.u32 %v3555_v9, %v3014_v8  ;;  %v2871_v41 = vor.u32 %v3519_v32, %v2870_v30  ;;  %v3549_v49 = vld [vmem:[#allocation5 + $0x584] sm:$0xf0]  ;;  %v3110_v50 = vld [vmem:[#allocation5 + $0x670] sm:$0xf] }
  0x56   :  { %1748 = vmatpush.bf16.msrb.mxu2 %v2671_v14  ;;  %v3505_v14 = vld [vmem:[#allocation5 + $0x424] sm:$0xf0]  ;;  %v3579_v51 = vld [vmem:[#allocation5 + $0x674] sm:$0xf0]  ;;  %v3238_v55 = vld [vmem:[#allocation5 + $0x770] sm:$0xf] }
  0x57   :  { %1761 = vmatpush.bf16.msrb.mxu3 %v2735_v17  ;;  %1723 = vmatmul.bf16.vlgmr.msrb.gmra.mxu0 %v3888_v0  ;;  %v3521_v17 = vld [vmem:[#allocation5 + $0x4a4] sm:$0xf0]  ;;  %v2815_v22 = vor.u32 %v3505_v14, %v2814_v13  ;;  %v3595_v54 = vld [vmem:[#allocation5 + $0x6f4] sm:$0xf0]  ;;  %v3111_v63 = vor.u32 %v3579_v51, %v3110_v50  ;;  %v3102_v5 = vld [vmem:[#allocation5 + $0x660] sm:$0xf] }
  0x58   :  { %1767 = vmatpush.bf16.msra.mxu0 %v2855_v18  ;;  %1736 = vmatmul.bf16.vlgmr.msrb.gmra.mxu1 %v3892_v2  ;;  %v2942_v18 = vld [vmem:[#allocation5 + $0x520] sm:$0xf]  ;;  %v2879_v23 = vor.u32 %v3521_v17, %v2878_v15  ;;  %v3611_v56 = vld [vmem:[#allocation5 + $0x774] sm:$0xf0]  ;;  %v3577_v6 = vld [vmem:[#allocation5 + $0x664] sm:$0xf0] }
  0x59   :  { %1780 = vmatpush.bf16.msra.mxu1 %v2919_v19  ;;  %1749 = vmatmul.bf16.vlgmr.msrb.gmra.mxu2 %v3886_v60  ;;  %v3537_v19 = vld [vmem:[#allocation5 + $0x524] sm:$0xf0]  ;;  %v3166_v7 = vld [vmem:[#allocation5 + $0x6e0] sm:$0xf]  ;;  %v3591_v25 = vld [vmem:[#allocation5 + $0x6d4] sm:$0xf0] }
  0x5a   :  { %1793 = vmatpush.bf16.msra.mxu2 %v2983_v20  ;;  %1762 = vmatmul.bf16.vlgmr.msrb.gmra.mxu3 %v3890_v1  ;;  %v3006_v20 = vld [vmem:[#allocation5 + $0x5a0] sm:$0xf]  ;;  %v3593_v9 = vld [vmem:[#allocation5 + $0x6e4] sm:$0xf0]  ;;  %v3222_v26 = vld [vmem:[#allocation5 + $0x750] sm:$0xf] }
  0x5b   :  { %1806 = vmatpush.bf16.msra.mxu3 %v3047_v24  ;;  %v2943_v24 = vor.u32 %v3537_v19, %v2942_v18  ;;  %v3007_v31 = vor.u32 %v3553_v21, %v3006_v20  ;;  %v3294_v13 = vld [vmem:[#allocation5 + $0x7e0] sm:$0xf]  ;;  %v3625_v14 = vld [vmem:[#allocation5 + $0x7e4] sm:$0xf0]  ;;  %v3103_v18 = vor.u32 %v3577_v6, %v3102_v5  ;;  %v3167_v19 = vor.u32 %v3593_v9, %v3166_v7  ;;  %v3094_v21 = vld [vmem:[#allocation5 + $0x650] sm:$0xf] }
  0x5c   :  { %1768 = vmatpush.bf16.msra.mxu0 %v2847_v33  ;;  %v2934_v33 = vld [vmem:[#allocation5 + $0x510] sm:$0xf]  ;;  %v361_v15 = vld [vmem:[#allocation1 + $0x12] sm:$0xff]  ;;  %v362_v17 = vld [vmem:[#allocation1 + $0x1b] sm:$0xff] }
  0x5d   :  { %1781 = vmatpush.bf16.msra.mxu1 %v2911_v35  ;;  %v3535_v35 = vld [vmem:[#allocation5 + $0x514] sm:$0xf0]  ;;  %v3605_v43 = vld [vmem:[#allocation5 + $0x744] sm:$0xf0]  ;;  %v3278_v44 = vld [vmem:[#allocation5 + $0x7c0] sm:$0xf] }
  0x5e   :  { %1794 = vmatpush.bf16.msra.mxu2 %v2975_v36  ;;  %v2998_v36 = vld [vmem:[#allocation5 + $0x590] sm:$0xf]  ;;  %v2935_v42 = vor.u32 %v3535_v35, %v2934_v33  ;;  %v3607_v30 = vld [vmem:[#allocation5 + $0x754] sm:$0xf0]  ;;  %v3585_v5 = vld [vmem:[#allocation5 + $0x6a4] sm:$0xf0] }
  0x5f   :  { %1807 = vmatpush.bf16.msra.mxu3 %v3039_v40  ;;  %v3501_v40 = vld [vmem:[#allocation5 + $0x404] sm:$0xf0]  ;;  %v3623_v32 = vld [vmem:[#allocation5 + $0x7d4] sm:$0xf0]  ;;  %v3142_v51 = vld [vmem:[#allocation5 + $0x6b0] sm:$0xf] }
  0x60   :  { %1769 = vmatpush.bf16.msra.mxu0 %v2839_v46  ;;  %v2999_v46 = vor.u32 %v3551_v37, %v2998_v36  ;;  %v2799_v53 = vor.u32 %v3501_v40, %v2798_v39  ;;  %v3223_v36 = vor.u32 %v3607_v30, %v3222_v26  ;;  %v3086_v37 = vld [vmem:[#allocation5 + $0x640] sm:$0xf]  ;;  %v3571_v50 = vld [vmem:[#allocation5 + $0x634] sm:$0xf0]  ;;  %v3601_v7 = vld [vmem:[#allocation5 + $0x724] sm:$0xf0] }
  0x61   :  { %1782 = vmatpush.bf16.msra.mxu1 %v2903_v47  ;;  %v3533_v47 = vld [vmem:[#allocation5 + $0x504] sm:$0xf0]  ;;  %v3150_v39 = vld [vmem:[#allocation5 + $0x6c0] sm:$0xf] }
  0x62   :  { %1795 = vmatpush.bf16.msra.mxu2 %v2967_v48  ;;  %v2990_v48 = vld [vmem:[#allocation5 + $0x580] sm:$0xf]  ;;  %v3617_v9 = vld [vmem:[#allocation5 + $0x7a4] sm:$0xf0] }
  0x63   :  { %1808 = vmatpush.bf16.msra.mxu3 %v3031_v52  ;;  %v3174_v52 = vld [vmem:[#allocation5 + $0x6f0] sm:$0xf]  ;;  %v2991_v62 = vor.u32 %v3549_v49, %v2990_v48  ;;  %v3198_v6 = vld [vmem:[#allocation5 + $0x720] sm:$0xf] }
  0x64   :  { %1770 = vmatpush.bf16.msra.mxu0 %v2831_v58  ;;  %v2927_v58 = vor.u32 %v3533_v47, %v2926_v45  ;;  %v3175_v3 = vor.u32 %v3595_v54, %v3174_v52  ;;  %v3621_v45 = vld [vmem:[#allocation5 + $0x7c4] sm:$0xf0]  ;;  %v3078_v49 = vld [vmem:[#allocation5 + $0x630] sm:$0xf]  ;;  %v3118_v30 = vld [vmem:[#allocation5 + $0x680] sm:$0xf] }
  0x65   :  { %1783 = vmatpush.bf16.msra.mxu1 %v2895_v59  ;;  %v3302_v59 = vld [vmem:[#allocation5 + $0x7f0] sm:$0xf]  ;;  %v3279_v52 = vor.u32 %v3621_v45, %v3278_v44  ;;  %v2472_v44 = vld [vmem:[#allocation5 + $0x178] sm:$0xf0] }
  0x66   :  { %1796 = vmatpush.bf16.msra.mxu2 %v2959_v61  ;;  %v3627_v61 = vld [vmem:[#allocation5 + $0x7f4] sm:$0xf0]  ;;  %v3206_v54 = vld [vmem:[#allocation5 + $0x730] sm:$0xf] }
  0x67   :  { %1809 = vmatpush.bf16.msra.mxu3 %v3023_v4  ;;  %v3239_v4 = vor.u32 %v3611_v56, %v3238_v55  ;;  %v3303_v8 = vor.u32 %v3627_v61, %v3302_v59  ;;  %v3603_v55 = vld [vmem:[#allocation5 + $0x734] sm:$0xf0]  ;;  %v3270_v56 = vld [vmem:[#allocation5 + $0x7b0] sm:$0xf] }
  0x68   :  { %1771 = vmatpush.bf16.msra.mxu0 %v2823_v10  ;;  %v3230_v10 = vld [vmem:[#allocation5 + $0x760] sm:$0xf]  ;;  %v3207_v61 = vor.u32 %v3603_v55, %v3206_v54  ;;  %v2336_v54 = vld [vmem:[#allocation5 + $0x68] sm:$0xf0]  ;;  %v3400_v55 = vld [vmem:[#allocation5 + $0xe4] sm:$0xf] }
  0x69   :  { %1784 = vmatpush.bf16.msra.mxu1 %v2887_v11  ;;  %v3609_v11 = vld [vmem:[#allocation5 + $0x764] sm:$0xf0] }
  0x6a   :  { %1797 = vmatpush.bf16.msra.mxu2 %v2951_v12  ;;  %v359_v12 = vld [vmem:[#allocation1] sm:$0xff]  ;;  %v3231_v20 = vor.u32 %v3609_v11, %v3230_v10 }
  0x6b   :  { %1810 = vmatpush.bf16.msra.mxu3 %v3015_v16  ;;  %v360_v16 = vld [vmem:[#allocation1 + $0x9] sm:$0xff] }
  0x6c   :  { %1772 = vmatpush.bf16.msra.mxu0 %v2815_v22  ;;  %v3575_v22 = vld [vmem:[#allocation5 + $0x654] sm:$0xf0] }
  0x6d   :  { %1785 = vmatpush.bf16.msra.mxu1 %v2879_v23  ;;  %v3158_v23 = vld [vmem:[#allocation5 + $0x6d0] sm:$0xf]  ;;  %v3095_v33 = vor.u32 %v3575_v22, %v3094_v21  ;;  %v3615_v21 = vld [vmem:[#allocation5 + $0x794] sm:$0xf0] }
  0x6e   :  { %1798 = vmatpush.bf16.msra.mxu2 %v2943_v24  ;;  %v3295_v24 = vor.u32 %v3625_v14, %v3294_v13  ;;  %v3159_v35 = vor.u32 %v3591_v25, %v3158_v23  ;;  %v3062_v13 = vld [vmem:[#allocation5 + $0x610] sm:$0xf]  ;;  %v3567_v14 = vld [vmem:[#allocation5 + $0x614] sm:$0xf0]  ;;  %v3054_v23 = vld [vmem:[#allocation5 + $0x600] sm:$0xf] }
  0x6f   :  { %1811 = vmatpush.bf16.msra.mxu3 %v3007_v31  ;;  %v3286_v31 = vld [vmem:[#allocation5 + $0x7d0] sm:$0xf]  ;;  %v3063_v22 = vor.u32 %v3567_v14, %v3062_v13  ;;  %v2392_v13 = vld [vmem:[#allocation5 + $0xd8] sm:$0xf0]  ;;  %v3414_v14 = vld [vmem:[#allocation5 + $0x154] sm:$0xf] }
  0x70   :  { %1773 = vmatpush.bf16.msra.mxu0 %v2807_v38  ;;  %v3573_v38 = vld [vmem:[#allocation5 + $0x644] sm:$0xf0]  ;;  %v3287_v40 = vor.u32 %v3623_v32, %v3286_v31  ;;  %v3182_v32 = vld [vmem:[#allocation5 + $0x700] sm:$0xf] }
  0x71   :  { %1786 = vmatpush.bf16.msra.mxu1 %v2871_v41  ;;  %v3589_v41 = vld [vmem:[#allocation5 + $0x6c4] sm:$0xf0] }
  0x72   :  { %1799 = vmatpush.bf16.msra.mxu2 %v2935_v42  ;;  %v3214_v42 = vld [vmem:[#allocation5 + $0x740] sm:$0xf]  ;;  %v3151_v47 = vor.u32 %v3589_v41, %v3150_v39  ;;  %v3581_v31 = vld [vmem:[#allocation5 + $0x684] sm:$0xf0]  ;;  %v2344_v39 = vld [vmem:[#allocation5 + $0x78] sm:$0xf0] }
  0x73   :  { %1812 = vmatpush.bf16.msra.mxu3 %v2999_v46  ;;  %v3087_v46 = vor.u32 %v3573_v38, %v3086_v37  ;;  %v3215_v48 = vor.u32 %v3605_v43, %v3214_v42  ;;  %v3613_v37 = vld [vmem:[#allocation5 + $0x784] sm:$0xf0]  ;;  %v3386_v38 = vld [vmem:[#allocation5 + $0x74] sm:$0xf]  ;;  %v2408_v42 = vld [vmem:[#allocation5 + $0xf8] sm:$0xf0]  ;;  %v3119_v45 = vor.u32 %v3581_v31, %v3118_v30 }
  0x74   :  { %1774 = vmatpush.bf16.msra.mxu0 %v2799_v53  ;;  %v3587_v53 = vld [vmem:[#allocation5 + $0x6b4] sm:$0xf0]  ;;  %v3418_v43 = vld [vmem:[#allocation5 + $0x174] sm:$0xf]  ;;  %v2448_v30 = vld [vmem:[#allocation5 + $0x148] sm:$0xf0] }
  0x75   :  { %1787 = vmatpush.bf16.msra.mxu1 %v2863_v57  ;;  %v3619_v57 = vld [vmem:[#allocation5 + $0x7b4] sm:$0xf0]  ;;  %v3143_v59 = vor.u32 %v3587_v53, %v3142_v51  ;;  %v3384_v53 = vld [vmem:[#allocation5 + $0x64] sm:$0xf] }
  0x76   :  { %1800 = vmatpush.bf16.msra.mxu2 %v2927_v58  ;;  %v3079_v58 = vor.u32 %v3571_v50, %v3078_v49  ;;  %v2347_v50 = vor.u32 %v3386_v38, %v2344_v39  ;;  %v3428_v31 = vld [vmem:[#allocation5 + $0x1c4] sm:$0xf]  ;;  %v2312_v38 = vld [vmem:[#allocation5 + $0x38] sm:$0xf0]  ;;  %v3394_v39 = vld [vmem:[#allocation5 + $0xb4] sm:$0xf] }
  0x77   :  { %1813 = vmatpush.bf16.msra.mxu3 %v2991_v62  ;;  %1775 = vmatmul.bf16.vlgmr.msra.gmra.mxu0 %v359_v12  ;;  %v3070_v62 = vld [vmem:[#allocation5 + $0x620] sm:$0xf]  ;;  %v3199_v12 = vor.u32 %v3601_v7, %v3198_v6  ;;  %v2339_v6 = vor.u32 %v3384_v53, %v2336_v54  ;;  %v2368_v53 = vld [vmem:[#allocation5 + $0xa8] sm:$0xf0]  ;;  %v3408_v54 = vld [vmem:[#allocation5 + $0x124] sm:$0xf] }
  0x78   :  { %1819 = vmatpush.bf16.msrb.mxu0 %v3111_v63  ;;  %1788 = vmatmul.bf16.vlgmr.msra.gmra.mxu1 %v360_v16  ;;  %v3569_v63 = vld [vmem:[#allocation5 + $0x624] sm:$0xf0] }
  0x79   :  { %1832 = vmatpush.bf16.msrb.mxu1 %v3175_v3  ;;  %1801 = vmatmul.bf16.vlgmr.msra.gmra.mxu2 %v361_v15  ;;  %v3134_v3 = vld [vmem:[#allocation5 + $0x6a0] sm:$0xf]  ;;  %v3071_v10 = vor.u32 %v3569_v63, %v3070_v62  ;;  %v3126_v15 = vld [vmem:[#allocation5 + $0x690] sm:$0xf]  ;;  %v3432_v62 = vld [vmem:[#allocation5 + $0x1e4] sm:$0xf] }
  0x7a   :  { %1845 = vmatpush.bf16.msrb.mxu2 %v3239_v4  ;;  %1814 = vmatmul.bf16.vlgmr.msra.gmra.mxu3 %v362_v17  ;;  %v3271_v4 = vor.u32 %v3619_v57, %v3270_v56  ;;  %v3135_v11 = vor.u32 %v3585_v5, %v3134_v3  ;;  %v3583_v17 = vld [vmem:[#allocation5 + $0x694] sm:$0xf0]  ;;  %v2400_v57 = vld [vmem:[#allocation5 + $0xe8] sm:$0xf0]  ;;  %v365_v3 = vld [vmem:[#allocation1 + $0x36] sm:$0xff] }
  0x7b   :  { %1858 = vmatpush.bf16.msrb.mxu3 %v3303_v8  ;;  %v3262_v8 = vld [vmem:[#allocation5 + $0x7a0] sm:$0xf]  ;;  %v3127_v25 = vor.u32 %v3583_v17, %v3126_v15  ;;  %v2528_v63 = vld [vmem:[#allocation5 + $0x1e8] sm:$0xf0]  ;;  %v2403_v7 = vor.u32 %v3400_v55, %v2400_v57  ;;  %v2456_v15 = vld [vmem:[#allocation5 + $0x158] sm:$0xf0] }
  0x7c   :  { %1820 = vmatpush.bf16.msrb.mxu0 %v3103_v18  ;;  %v3263_v16 = vor.u32 %v3617_v9, %v3262_v8  ;;  %v3190_v18 = vld [vmem:[#allocation5 + $0x710] sm:$0xf]  ;;  %v366_v5 = vld [vmem:[#allocation1 + $0x3f] sm:$0xff]  ;;  %v3382_v9 = vld [vmem:[#allocation5 + $0x54] sm:$0xf] }
  0x7d   :  { %1833 = vmatpush.bf16.msrb.mxu1 %v3167_v19  ;;  %v3599_v19 = vld [vmem:[#allocation5 + $0x714] sm:$0xf0]  ;;  %v2520_v17 = vld [vmem:[#allocation5 + $0x1d8] sm:$0xf0]  ;;  %v2432_v55 = vld [vmem:[#allocation5 + $0x128] sm:$0xf0] }
  0x7e   :  { %1846 = vmatpush.bf16.msrb.mxu2 %v3231_v20  ;;  %v3254_v20 = vld [vmem:[#allocation5 + $0x790] sm:$0xf]  ;;  %v3191_v26 = vor.u32 %v3599_v19, %v3190_v18  ;;  %v2496_v57 = vld [vmem:[#allocation5 + $0x1a8] sm:$0xf0] }
  0x7f   :  { %1859 = vmatpush.bf16.msrb.mxu3 %v3295_v24  ;;  %v3565_v24 = vld [vmem:[#allocation5 + $0x604] sm:$0xf0] }
  0x80   :  { %1821 = vmatpush.bf16.msrb.mxu0 %v3095_v33  ;;  %v3255_v33 = vor.u32 %v3615_v21, %v3254_v20  ;;  %v3055_v41 = vor.u32 %v3565_v24, %v3054_v23  ;;  %v2459_v20 = vor.u32 %v3414_v14, %v2456_v15  ;;  %v3380_v21 = vld [vmem:[#allocation5 + $0x44] sm:$0xf] }
  0x81   :  { %1834 = vmatpush.bf16.msrb.mxu1 %v3159_v35  ;;  %v3597_v35 = vld [vmem:[#allocation5 + $0x704] sm:$0xf0]  ;;  %v3396_v23 = vld [vmem:[#allocation5 + $0xc4] sm:$0xf] }
  0x82   :  { %1847 = vmatpush.bf16.msrb.mxu2 %v3223_v36  ;;  %v3246_v36 = vld [vmem:[#allocation5 + $0x780] sm:$0xf]  ;;  %v3388_v15 = vld [vmem:[#allocation5 + $0x84] sm:$0xf] }
  0x83   :  { %1860 = vmatpush.bf16.msrb.mxu3 %v3287_v40  ;;  %v3402_v40 = vld [vmem:[#allocation5 + $0xf4] sm:$0xf]  ;;  %v3247_v49 = vor.u32 %v3613_v37, %v3246_v36 }
  0x84   :  { %1822 = vmatpush.bf16.msrb.mxu0 %v3087_v46  ;;  %v3183_v46 = vor.u32 %v3597_v35, %v3182_v32  ;;  %v2411_v51 = vor.u32 %v3402_v40, %v2408_v42  ;;  %v2512_v32 = vld [vmem:[#allocation5 + $0x1c8] sm:$0xf0]  ;;  %v3378_v37 = vld [vmem:[#allocation5 + $0x34] sm:$0xf] }
  0x85   :  { %1835 = vmatpush.bf16.msrb.mxu1 %v3151_v47  ;;  %v3434_v47 = vld [vmem:[#allocation5 + $0x1f4] sm:$0xf]  ;;  %v2515_v40 = vor.u32 %v3428_v31, %v2512_v32  ;;  %v2728_v31 = vld [vmem:[#allocation5 + $0x378] sm:$0xf0] }
  0x86   :  { %1848 = vmatpush.bf16.msrb.mxu2 %v3215_v48  ;;  %v2536_v48 = vld [vmem:[#allocation5 + $0x1f8] sm:$0xf0]  ;;  %v3410_v42 = vld [vmem:[#allocation5 + $0x134] sm:$0xf] }
  0x87   :  { %1861 = vmatpush.bf16.msrb.mxu3 %v3279_v52  ;;  %v2475_v52 = vor.u32 %v3418_v43, %v2472_v44  ;;  %v2539_v56 = vor.u32 %v3434_v47, %v2536_v48  ;;  %v2440_v43 = vld [vmem:[#allocation5 + $0x138] sm:$0xf0]  ;;  %v3426_v44 = vld [vmem:[#allocation5 + $0x1b4] sm:$0xf] }
  0x88   :  { %1823 = vmatpush.bf16.msrb.mxu0 %v3079_v58  ;;  %v3416_v58 = vld [vmem:[#allocation5 + $0x164] sm:$0xf]  ;;  %v2443_v48 = vor.u32 %v3410_v42, %v2440_v43  ;;  %v2592_v42 = vld [vmem:[#allocation5 + $0x268] sm:$0xf0] }
  0x89   :  { %1836 = vmatpush.bf16.msrb.mxu1 %v3143_v59  ;;  %v2464_v59 = vld [vmem:[#allocation5 + $0x168] sm:$0xf0]  ;;  %v3464_v43 = vld [vmem:[#allocation5 + $0x2e4] sm:$0xf] }
  0x8a   :  { %1849 = vmatpush.bf16.msrb.mxu2 %v3207_v61  ;;  %v363_v61 = vld [vmem:[#allocation1 + $0x24] sm:$0xff]  ;;  %v2467_v8 = vor.u32 %v3416_v58, %v2464_v59 }
  0x8b   :  { %1862 = vmatpush.bf16.msrb.mxu3 %v3271_v4  ;;  %v364_v4 = vld [vmem:[#allocation1 + $0x2d] sm:$0xff] }
  0x8c   :  { %1824 = vmatpush.bf16.msrb.mxu0 %v3071_v10  ;;  %v2328_v10 = vld [vmem:[#allocation5 + $0x58] sm:$0xf0] }
  0x8d   :  { %1837 = vmatpush.bf16.msrb.mxu1 %v3135_v11  ;;  %v3398_v11 = vld [vmem:[#allocation5 + $0xd4] sm:$0xf]  ;;  %v2331_v18 = vor.u32 %v3382_v9, %v2328_v10  ;;  %v2488_v9 = vld [vmem:[#allocation5 + $0x198] sm:$0xf0] }
  0x8e   :  { %1850 = vmatpush.bf16.msrb.mxu2 %v3199_v12  ;;  %v2531_v12 = vor.u32 %v3432_v62, %v2528_v63  ;;  %v2395_v19 = vor.u32 %v3398_v11, %v2392_v13  ;;  %v3374_v62 = vld [vmem:[#allocation5 + $0x14] sm:$0xf]  ;;  %v2296_v63 = vld [vmem:[#allocation5 + $0x18] sm:$0xf0]  ;;  %v3372_v11 = vld [vmem:[#allocation5 + $0x4] sm:$0xf] }
  0x8f   :  { %1863 = vmatpush.bf16.msrb.mxu3 %v3263_v16  ;;  %v3430_v16 = vld [vmem:[#allocation5 + $0x1d4] sm:$0xf]  ;;  %v2299_v10 = vor.u32 %v3374_v62, %v2296_v63  ;;  %v2776_v62 = vld [vmem:[#allocation5 + $0x3d8] sm:$0xf0] }
  0x90   :  { %1825 = vmatpush.bf16.msrb.mxu0 %v3063_v22  ;;  %v2320_v22 = vld [vmem:[#allocation5 + $0x48] sm:$0xf0]  ;;  %v2523_v24 = vor.u32 %v3430_v16, %v2520_v17  ;;  %v3404_v17 = vld [vmem:[#allocation5 + $0x104] sm:$0xf] }
  0x91   :  { %1838 = vmatpush.bf16.msrb.mxu1 %v3127_v25  ;;  %v2384_v25 = vld [vmem:[#allocation5 + $0xc8] sm:$0xf0] }
  0x92   :  { %1851 = vmatpush.bf16.msrb.mxu2 %v3191_v26  ;;  %v3412_v26 = vld [vmem:[#allocation5 + $0x144] sm:$0xf]  ;;  %v2387_v35 = vor.u32 %v3396_v23, %v2384_v25  ;;  %v2352_v16 = vld [vmem:[#allocation5 + $0x88] sm:$0xf0]  ;;  %v2600_v23 = vld [vmem:[#allocation5 + $0x278] sm:$0xf0] }
  0x93   :  { %1864 = vmatpush.bf16.msrb.mxu3 %v3255_v33  ;;  %v2323_v33 = vor.u32 %v3380_v21, %v2320_v22  ;;  %v2451_v36 = vor.u32 %v3412_v26, %v2448_v30  ;;  %v2480_v21 = vld [vmem:[#allocation5 + $0x188] sm:$0xf0]  ;;  %v3450_v22 = vld [vmem:[#allocation5 + $0x274] sm:$0xf]  ;;  %v2664_v26 = vld [vmem:[#allocation5 + $0x2f8] sm:$0xf0]  ;;  %v2355_v32 = vor.u32 %v3388_v15, %v2352_v16 }
  0x94   :  { %1826 = vmatpush.bf16.msrb.mxu0 %v3055_v41  ;;  %v2376_v41 = vld [vmem:[#allocation5 + $0xb8] sm:$0xf0]  ;;  %v3482_v30 = vld [vmem:[#allocation5 + $0x374] sm:$0xf] }
  0x95   :  { %1839 = vmatpush.bf16.msrb.mxu1 %v3119_v45  ;;  %v2504_v45 = vld [vmem:[#allocation5 + $0x1b8] sm:$0xf0]  ;;  %v2379_v47 = vor.u32 %v3394_v39, %v2376_v41  ;;  %v3448_v41 = vld [vmem:[#allocation5 + $0x264] sm:$0xf]  ;;  %v3458_v15 = vld [vmem:[#allocation5 + $0x2b4] sm:$0xf] }
  0x96   :  { %1852 = vmatpush.bf16.msrb.mxu2 %v3183_v46  ;;  %v2315_v46 = vor.u32 %v3378_v37, %v2312_v38  ;;  %v2603_v38 = vor.u32 %v3450_v22, %v2600_v23  ;;  %v3440_v23 = vld [vmem:[#allocation5 + $0x224] sm:$0xf] }
  0x97   :  { %1865 = vmatpush.bf16.msrb.mxu3 %v3247_v49  ;;  %1827 = vmatmul.bf16.vlgmr.msrb.gmra.mxu0 %v363_v61  ;;  %v3376_v49 = vld [vmem:[#allocation5 + $0x24] sm:$0xf]  ;;  %v2435_v61 = vor.u32 %v3408_v54, %v2432_v55  ;;  %v2584_v54 = vld [vmem:[#allocation5 + $0x258] sm:$0xf0]  ;;  %v3462_v55 = vld [vmem:[#allocation5 + $0x2d4] sm:$0xf] }
  0x98   :  { %1871 = vmatpush.bf16.msra.mxu0 %v2347_v50  ;;  %1840 = vmatmul.bf16.vlgmr.msrb.gmra.mxu1 %v364_v4  ;;  %v2304_v50 = vld [vmem:[#allocation5 + $0x28] sm:$0xf0] }
  0x99   :  { %1884 = vmatpush.bf16.msra.mxu1 %v2411_v51  ;;  %1853 = vmatmul.bf16.vlgmr.msrb.gmra.mxu2 %v365_v3  ;;  %v3392_v51 = vld [vmem:[#allocation5 + $0xa4] sm:$0xf]  ;;  %v2307_v58 = vor.u32 %v3376_v49, %v2304_v50  ;;  %v3390_v3 = vld [vmem:[#allocation5 + $0x94] sm:$0xf]  ;;  %v2784_v49 = vld [vmem:[#allocation5 + $0x3e8] sm:$0xf0]  ;;  %v2595_v50 = vor.u32 %v3448_v41, %v2592_v42 }
  0x9a   :  { %1897 = vmatpush.bf16.msra.mxu2 %v2475_v52  ;;  %1866 = vmatmul.bf16.vlgmr.msrb.gmra.mxu3 %v366_v5  ;;  %v2507_v52 = vor.u32 %v3426_v44, %v2504_v45  ;;  %v2371_v59 = vor.u32 %v3392_v51, %v2368_v53  ;;  %v2360_v5 = vld [vmem:[#allocation5 + $0x98] sm:$0xf0]  ;;  %v2656_v45 = vld [vmem:[#allocation5 + $0x2e8] sm:$0xf0]  ;;  %v3446_v53 = vld [vmem:[#allocation5 + $0x254] sm:$0xf] }
  0x9b   :  { %1910 = vmatpush.bf16.msra.mxu3 %v2539_v56  ;;  %v3424_v56 = vld [vmem:[#allocation5 + $0x1a4] sm:$0xf]  ;;  %v2363_v13 = vor.u32 %v3390_v3, %v2360_v5  ;;  %v2659_v51 = vor.u32 %v3464_v43, %v2656_v45  ;;  %v2587_v63 = vor.u32 %v3446_v53, %v2584_v54  ;;  %v2552_v43 = vld [vmem:[#allocation5 + $0x218] sm:$0xf0]  ;;  %v2544_v54 = vld [vmem:[#allocation5 + $0x208] sm:$0xf0] }
  0x9c   :  { %1872 = vmatpush.bf16.msra.mxu0 %v2339_v6  ;;  %v2499_v4 = vor.u32 %v3424_v56, %v2496_v57  ;;  %v3406_v6 = vld [vmem:[#allocation5 + $0x114] sm:$0xf]  ;;  %v2648_v57 = vld [vmem:[#allocation5 + $0x2d8] sm:$0xf0]  ;;  %v3444_v5 = vld [vmem:[#allocation5 + $0x244] sm:$0xf] }
  0x9d   :  { %1885 = vmatpush.bf16.msra.mxu1 %v2403_v7  ;;  %v2424_v7 = vld [vmem:[#allocation5 + $0x118] sm:$0xf0]  ;;  %v2651_v3 = vor.u32 %v3462_v55, %v2648_v57  ;;  %v3436_v53 = vld [vmem:[#allocation5 + $0x204] sm:$0xf] }
  0x9e   :  { %1898 = vmatpush.bf16.msra.mxu2 %v2467_v8  ;;  %v3422_v8 = vld [vmem:[#allocation5 + $0x194] sm:$0xf]  ;;  %v2427_v14 = vor.u32 %v3406_v6, %v2424_v7  ;;  %v2576_v6 = vld [vmem:[#allocation5 + $0x248] sm:$0xf0]  ;;  %v3460_v7 = vld [vmem:[#allocation5 + $0x2c4] sm:$0xf] }
  0x9f   :  { %1911 = vmatpush.bf16.msra.mxu3 %v2531_v12  ;;  %v2288_v12 = vld [vmem:[#allocation5 + $0x8] sm:$0xf0] }
  0xa0   :  { %1873 = vmatpush.bf16.msra.mxu0 %v2331_v18  ;;  %v2491_v18 = vor.u32 %v3422_v8, %v2488_v9  ;;  %v2291_v25 = vor.u32 %v3372_v11, %v2288_v12  ;;  %v3476_v9 = vld [vmem:[#allocation5 + $0x344] sm:$0xf] }
  0xa1   :  { %1886 = vmatpush.bf16.msra.mxu1 %v2395_v19  ;;  %v2416_v19 = vld [vmem:[#allocation5 + $0x108] sm:$0xf0]  ;;  %v3492_v11 = vld [vmem:[#allocation5 + $0x3c4] sm:$0xf] }
  0xa2   :  { %1899 = vmatpush.bf16.msra.mxu2 %v2459_v20  ;;  %v3420_v20 = vld [vmem:[#allocation5 + $0x184] sm:$0xf] }
  0xa3   :  { %1912 = vmatpush.bf16.msra.mxu3 %v2523_v24  ;;  %v3466_v24 = vld [vmem:[#allocation5 + $0x2f4] sm:$0xf]  ;;  %v2483_v37 = vor.u32 %v3420_v20, %v2480_v21  ;;  %v2760_v21 = vld [vmem:[#allocation5 + $0x3b8] sm:$0xf0] }
  0xa4   :  { %1874 = vmatpush.bf16.msra.mxu0 %v2323_v33  ;;  %v2419_v33 = vor.u32 %v3404_v17, %v2416_v19  ;;  %v2667_v39 = vor.u32 %v3466_v24, %v2664_v26  ;;  %v2632_v17 = vld [vmem:[#allocation5 + $0x2b8] sm:$0xf0]  ;;  %v3490_v20 = vld [vmem:[#allocation5 + $0x3b4] sm:$0xf]  ;;  %v2560_v26 = vld [vmem:[#allocation5 + $0x228] sm:$0xf0] }
  0xa5   :  { %1887 = vmatpush.bf16.msra.mxu1 %v2387_v35  ;;  %v3498_v35 = vld [vmem:[#allocation5 + $0x3f4] sm:$0xf]  ;;  %v2696_v19 = vld [vmem:[#allocation5 + $0x338] sm:$0xf0]  ;;  %v2635_v24 = vor.u32 %v3458_v15, %v2632_v17 }
  0xa6   :  { %1900 = vmatpush.bf16.msra.mxu2 %v2451_v36  ;;  %v2792_v36 = vld [vmem:[#allocation5 + $0x3f8] sm:$0xf0] }
  0xa7   :  { %1913 = vmatpush.bf16.msra.mxu3 %v2515_v40  ;;  %v2731_v40 = vor.u32 %v3482_v30, %v2728_v31  ;;  %v2795_v44 = vor.u32 %v3498_v35, %v2792_v36  ;;  %v3456_v30 = vld [vmem:[#allocation5 + $0x2a4] sm:$0xf]  ;;  %v2624_v31 = vld [vmem:[#allocation5 + $0x2a8] sm:$0xf0]  ;;  %v3902_v36 = vld [vmem:[#allocation7] sm:$0x3] }
  0xa8   :  { %1875 = vmatpush.bf16.msra.mxu0 %v2315_v46  ;;  %v3480_v46 = vld [vmem:[#allocation5 + $0x364] sm:$0xf]  ;;  %v2688_v35 = vld [vmem:[#allocation5 + $0x328] sm:$0xf0]  ;;  %v2627_v41 = vor.u32 %v3456_v30, %v2624_v31  ;;  %v343_v45 = vperm.slane %v3902_v36, 0 }
  0xa9   :  { %1888 = vmatpush.bf16.msra.mxu1 %v2379_v47  ;;  %v2720_v47 = vld [vmem:[#allocation5 + $0x368] sm:$0xf0]  ;;  %v3544_v30 = vld [vmem:[#allocation5 + $0x564] sm:$0xf] }
  0xaa   :  { %1901 = vmatpush.bf16.msra.mxu2 %v2443_v48  ;;  %v3496_v48 = vld [vmem:[#allocation5 + $0x3e4] sm:$0xf]  ;;  %v2976_v31 = vld [vmem:[#allocation5 + $0x568] sm:$0xf0] }
  0xab   :  { %1914 = vmatpush.bf16.msra.mxu3 %v2507_v52  ;;  %v2723_v52 = vor.u32 %v3480_v46, %v2720_v47  ;;  %v2787_v56 = vor.u32 %v3496_v48, %v2784_v49  ;;  %v2616_v47 = vld [vmem:[#allocation5 + $0x298] sm:$0xf0]  ;;  %v3470_v48 = vld [vmem:[#allocation5 + $0x314] sm:$0xf] }
  0xac   :  { %1876 = vmatpush.bf16.msra.mxu0 %v2307_v58  ;;  %v3478_v58 = vld [vmem:[#allocation5 + $0x354] sm:$0xf]  ;;  %v2680_v49 = vld [vmem:[#allocation5 + $0x318] sm:$0xf0] }
  0xad   :  { %1889 = vmatpush.bf16.msra.mxu1 %v2371_v59  ;;  %v2712_v59 = vld [vmem:[#allocation5 + $0x358] sm:$0xf0]  ;;  %v2683_v57 = vor.u32 %v3470_v48, %v2680_v49  ;;  %v3558_v49 = vld [vmem:[#allocation5 + $0x5d4] sm:$0xf] }
  0xae   :  { %1902 = vmatpush.bf16.msra.mxu2 %v2435_v61  ;;  %v3494_v61 = vld [vmem:[#allocation5 + $0x3d4] sm:$0xf]  ;;  %v2968_v48 = vld [vmem:[#allocation5 + $0x558] sm:$0xf0] }
  0xaf   :  { %1915 = vmatpush.bf16.msra.mxu3 %v2499_v4  ;;  %v2715_v4 = vor.u32 %v3478_v58, %v2712_v59  ;;  %v2779_v8 = vor.u32 %v3494_v61, %v2776_v62  ;;  %v3452_v58 = vld [vmem:[#allocation5 + $0x284] sm:$0xf]  ;;  %v2608_v59 = vld [vmem:[#allocation5 + $0x288] sm:$0xf0] }
  0xb0   :  { %1877 = vmatpush.bf16.msra.mxu0 %v2299_v10  ;;  %v2704_v10 = vld [vmem:[#allocation5 + $0x348] sm:$0xf0]  ;;  %v3468_v61 = vld [vmem:[#allocation5 + $0x304] sm:$0xf] }
  0xb1   :  { %1890 = vmatpush.bf16.msra.mxu1 %v2363_v13  ;;  %v3442_v13 = vld [vmem:[#allocation5 + $0x234] sm:$0xf] }
  0xb2   :  { %1903 = vmatpush.bf16.msra.mxu2 %v2427_v14  ;;  %v2568_v14 = vld [vmem:[#allocation5 + $0x238] sm:$0xf0] }
  0xb3   :  { %1916 = vmatpush.bf16.msra.mxu3 %v2491_v18  ;;  %v3474_v18 = vld [vmem:[#allocation5 + $0x334] sm:$0xf]  ;;  %v2571_v22 = vor.u32 %v3442_v13, %v2568_v14  ;;  %v3048_v14 = vld [vmem:[#allocation5 + $0x5f8] sm:$0xf0] }
  0xb4   :  { %1878 = vmatpush.bf16.msra.mxu0 %v2291_v25  ;;  %v2699_v25 = vor.u32 %v3474_v18, %v2696_v19  ;;  %v3562_v13 = vld [vmem:[#allocation5 + $0x5f4] sm:$0xf] }
  0xb5   :  { %1891 = vmatpush.bf16.msra.mxu1 %v2355_v32  ;;  %v2763_v32 = vor.u32 %v3490_v20, %v2760_v21 }
  0xb6   :  { %1904 = vmatpush.bf16.msra.mxu2 %v2419_v33  ;;  %v3472_v33 = vld [vmem:[#allocation5 + $0x324] sm:$0xf] }
  0xb7   :  { %1917 = vmatpush.bf16.msra.mxu3 %v2483_v37  ;;  %1879 = vmatmul.bf16.vlgmr.msra.gmra.mxu0 %v3876_v28  ;;  %v2768_v28 = vld [vmem:[#allocation5 + $0x3c8] sm:$0xf0]  ;;  %v3488_v37 = vld [vmem:[#allocation5 + $0x3a4] sm:$0xf]  ;;  %v2691_v42 = vor.u32 %v3472_v33, %v2688_v35 }
  0xb8   :  { %1923 = vmatpush.bf16.msrb.mxu0 %v2603_v38  ;;  %1892 = vmatmul.bf16.vlgmr.msra.gmra.mxu1 %v3880_v34  ;;  %v2707_v34 = vor.u32 %v3476_v9, %v2704_v10  ;;  %v2771_v16 = vor.u32 %v3492_v11, %v2768_v28  ;;  %v2752_v38 = vld [vmem:[#allocation5 + $0x3a8] sm:$0xf0]  ;;  %v2547_v10 = vor.u32 %v3436_v53, %v2544_v54  ;;  %v2920_v11 = vld [vmem:[#allocation5 + $0x4f8] sm:$0xf0]  ;;  %v3546_v28 = vld [vmem:[#allocation5 + $0x574] sm:$0xf] }
  0xb9   :  { %1936 = vmatpush.bf16.msrb.mxu1 %v2667_v39  ;;  %1905 = vmatmul.bf16.vlgmr.msra.gmra.mxu2 %v3874_v27  ;;  %v2640_v27 = vld [vmem:[#allocation5 + $0x2c8] sm:$0xf0]  ;;  %v2563_v39 = vor.u32 %v3440_v23, %v2560_v26  ;;  %v2755_v46 = vor.u32 %v3488_v37, %v2752_v38  ;;  %v3560_v35 = vld [vmem:[#allocation5 + $0x5e4] sm:$0xf] }
  0xba   :  { %1949 = vmatpush.bf16.msrb.mxu2 %v2731_v40  ;;  %1918 = vmatmul.bf16.vlgmr.msra.gmra.mxu3 %v3878_v29  ;;  %v2579_v29 = vor.u32 %v3444_v5, %v2576_v6  ;;  %v2643_v12 = vor.u32 %v3460_v7, %v2640_v27  ;;  %v3438_v40 = vld [vmem:[#allocation5 + $0x214] sm:$0xf]  ;;  %v1672_v55 = vpop.f32.mrf.mxu0  ;;  %v3484_v5 = vld [vmem:[#allocation5 + $0x384] sm:$0xf]  ;;  %v2736_v6 = vld [vmem:[#allocation5 + $0x388] sm:$0xf0] }
  0xbb   :  { %1962 = vmatpush.bf16.msrb.mxu3 %v2795_v44  ;;  %v3454_v44 = vld [vmem:[#allocation5 + $0x294] sm:$0xf]  ;;  %v1673_v62 = vadd.f32 %v1672_v55, %v343_v45  ;;  %v2848_v23 = vld [vmem:[#allocation5 + $0x468] sm:$0xf0] }
  0xbc   :  { %1924 = vmatpush.bf16.msrb.mxu0 %v2595_v50  ;;  %v3486_v50 = vld [vmem:[#allocation5 + $0x394] sm:$0xf]  ;;  %v2912_v26 = vld [vmem:[#allocation5 + $0x4e8] sm:$0xf0] }
  0xbd   :  { %1937 = vmatpush.bf16.msrb.mxu1 %v2659_v51  ;;  %v2744_v51 = vld [vmem:[#allocation5 + $0x398] sm:$0xf0]  ;;  %v3514_v7 = vld [vmem:[#allocation5 + $0x474] sm:$0xf]  ;;  %v3040_v37 = vld [vmem:[#allocation5 + $0x5e8] sm:$0xf0] }
  0xbe   :  { %1950 = vmatpush.bf16.msrb.mxu2 %v2723_v52  ;;  %v2555_v52 = vor.u32 %v3438_v40, %v2552_v43  ;;  %v3530_v27 = vld [vmem:[#allocation5 + $0x4f4] sm:$0xf]  ;;  %v2840_v43 = vld [vmem:[#allocation5 + $0x458] sm:$0xf0]  ;;  %v3043_v45 = vor.u32 %v3560_v35, %v3040_v37 }
  0xbf   :  { %1963 = vmatpush.bf16.msrb.mxu3 %v2787_v56  ;;  %v2619_v56 = vor.u32 %v3454_v44, %v2616_v47  ;;  %v1698_v15 = vpop.f32.mrf.mxu2  ;;  %v2923_v20 = vor.u32 %v3530_v27, %v2920_v11  ;;  %v3526_v44 = vld [vmem:[#allocation5 + $0x4d4] sm:$0xf]  ;;  %v2952_v11 = vld [vmem:[#allocation5 + $0x538] sm:$0xf0] }
  0xc0   :  { %1925 = vmatpush.bf16.msrb.mxu0 %v2587_v63  ;;  %v1685_v63 = vpop.f32.mrf.mxu1  ;;  %v3542_v47 = vld [vmem:[#allocation5 + $0x554] sm:$0xf]  ;;  %v2808_v35 = vld [vmem:[#allocation5 + $0x418] sm:$0xf0] }
  0xc1   :  { %1938 = vmatpush.bf16.msrb.mxu1 %v2651_v3  ;;  %v2747_v3 = vor.u32 %v3486_v50, %v2744_v51  ;;  %v1686_v9 = vadd.f32 %v1685_v63, %v1673_v62  ;;  %v1711_v19 = vpop.f32.mrf.mxu3  ;;  %v3032_v50 = vld [vmem:[#allocation5 + $0x5d8] sm:$0xf0]  ;;  %v2971_v55 = vor.u32 %v3542_v47, %v2968_v48  ;;  %v3556_v62 = vld [vmem:[#allocation5 + $0x5c4] sm:$0xf]  ;;  %v3518_v37 = vld [vmem:[#allocation5 + $0x494] sm:$0xf] }
  0xc2   :  { %1951 = vmatpush.bf16.msrb.mxu2 %v2715_v4  ;;  %v2672_v4 = vld [vmem:[#allocation5 + $0x308] sm:$0xf0]  ;;  %v1674_v33 = vpop.f32.mrf.mxu0 }
  0xc3   :  { %1964 = vmatpush.bf16.msrb.mxu3 %v2779_v8  ;;  %v2856_v8 = vld [vmem:[#allocation5 + $0x478] sm:$0xf0]  ;;  %v1699_v18 = vadd.f32 %v1698_v15, %v1686_v9  ;;  %v2816_v15 = vld [vmem:[#allocation5 + $0x428] sm:$0xf0]  ;;  %v3502_v33 = vld [vmem:[#allocation5 + $0x414] sm:$0xf] }
  0xc4   :  { %1926 = vmatpush.bf16.msrb.mxu0 %v2579_v29  ;;  %v2984_v29 = vld [vmem:[#allocation5 + $0x578] sm:$0xf0]  ;;  %v2859_v17 = vor.u32 %v3514_v7, %v2856_v8  ;;  %v3522_v7 = vld [vmem:[#allocation5 + $0x4b4] sm:$0xf]  ;;  %v2800_v47 = vld [vmem:[#allocation5 + $0x408] sm:$0xf0] }
  0xc5   :  { %1939 = vmatpush.bf16.msrb.mxu1 %v2643_v12  ;;  %v2611_v12 = vor.u32 %v3452_v58, %v2608_v59  ;;  %v2987_v21 = vor.u32 %v3546_v28, %v2984_v29  ;;  %v3035_v58 = vor.u32 %v3558_v49, %v3032_v50  ;;  %v2896_v59 = vld [vmem:[#allocation5 + $0x4c8] sm:$0xf0]  ;;  %v2888_v9 = vld [vmem:[#allocation5 + $0x4b8] sm:$0xf0]  ;;  %v3554_v28 = vld [vmem:[#allocation5 + $0x5b4] sm:$0xf] }
  0xc6   :  { %1952 = vmatpush.bf16.msrb.mxu2 %v2707_v34  ;;  %v2675_v34 = vor.u32 %v3468_v61, %v2672_v4  ;;  %v3540_v61 = vld [vmem:[#allocation5 + $0x544] sm:$0xf]  ;;  %v3016_v29 = vld [vmem:[#allocation5 + $0x5b8] sm:$0xf0] }
  0xc7   :  { %1965 = vmatpush.bf16.msrb.mxu3 %v2771_v16  ;;  %v2739_v16 = vor.u32 %v3484_v5, %v2736_v6  ;;  %v1700_v51 = vpop.f32.mrf.mxu2  ;;  %v3506_v5 = vld [vmem:[#allocation5 + $0x434] sm:$0xf]  ;;  %v2824_v6 = vld [vmem:[#allocation5 + $0x438] sm:$0xf0]  ;;  %v3516_v50 = vld [vmem:[#allocation5 + $0x484] sm:$0xf] }
  0xc8   :  { %1927 = vmatpush.bf16.msrb.mxu0 %v2571_v22  ;;  %v3512_v22 = vld [vmem:[#allocation5 + $0x464] sm:$0xf]  ;;  %v1687_v38 = vpop.f32.mrf.mxu1  ;;  %v2864_v51 = vld [vmem:[#allocation5 + $0x488] sm:$0xf0] }
  0xc9   :  { %1940 = vmatpush.bf16.msrb.mxu1 %v2635_v24  ;;  %v3528_v24 = vld [vmem:[#allocation5 + $0x4e4] sm:$0xf]  ;;  %v1713_v53 = vpop.f32.mrf.mxu3 }
  0xca   :  { %1953 = vmatpush.bf16.msrb.mxu2 %v2699_v25  ;;  %v3051_v25 = vor.u32 %v3562_v13, %v3048_v14  ;;  %v2915_v40 = vor.u32 %v3528_v24, %v2912_v26  ;;  %v3504_v14 = vld [vmem:[#allocation5 + $0x424] sm:$0xf]  ;;  %v3008_v24 = vld [vmem:[#allocation5 + $0x5a8] sm:$0xf0] }
  0xcb   :  { %1966 = vmatpush.bf16.msrb.mxu3 %v2763_v32  ;;  %v3905_v32 = vadd.f32 %v1711_v19, %v1699_v18  ;;  %v3019_v18 = vor.u32 %v3554_v28, %v3016_v29  ;;  %v2880_v19 = vld [vmem:[#allocation5 + $0x4a8] sm:$0xf0]  ;;  %v3592_v29 = vld [vmem:[#allocation5 + $0x6e4] sm:$0xf] }
  0xcc   :  { %1928 = vmatpush.bf16.msrb.mxu0 %v2563_v39  ;;  %v2851_v39 = vor.u32 %v3512_v22, %v2848_v23  ;;  %v3552_v23 = vld [vmem:[#allocation5 + $0x5a4] sm:$0xf]  ;;  %v3104_v28 = vld [vmem:[#allocation5 + $0x668] sm:$0xf0] }
  0xcd   :  { %1941 = vmatpush.bf16.msrb.mxu1 %v2627_v41  ;;  %v2979_v41 = vor.u32 %v3544_v30, %v2976_v31 }
  0xce   :  { %1954 = vmatpush.bf16.msrb.mxu2 %v2691_v42  ;;  %v3510_v42 = vld [vmem:[#allocation5 + $0x454] sm:$0xf] }
  0xcf   :  { %1967 = vmatpush.bf16.msrb.mxu3 %v2755_v46  ;;  %v2904_v46 = vld [vmem:[#allocation5 + $0x4d8] sm:$0xf0] }
  0xd0   :  { %1929 = vmatpush.bf16.msrb.mxu0 %v2555_v52  ;;  %v2843_v52 = vor.u32 %v3510_v42, %v2840_v43  ;;  %v2907_v54 = vor.u32 %v3526_v44, %v2904_v46  ;;  %v2936_v42 = vld [vmem:[#allocation5 + $0x518] sm:$0xf0]  ;;  %v3550_v43 = vld [vmem:[#allocation5 + $0x594] sm:$0xf]  ;;  %v3500_v46 = vld [vmem:[#allocation5 + $0x404] sm:$0xf] }
  0xd1   :  { %1942 = vmatpush.bf16.msrb.mxu1 %v2619_v56  ;;  %v2832_v56 = vld [vmem:[#allocation5 + $0x448] sm:$0xf0]  ;;  %v3000_v44 = vld [vmem:[#allocation5 + $0x598] sm:$0xf0] }
  0xd2   :  { %1955 = vmatpush.bf16.msrb.mxu2 %v2683_v57  ;;  %v3524_v57 = vld [vmem:[#allocation5 + $0x4c4] sm:$0xf] }
  0xd3   :  { %1968 = vmatpush.bf16.msrb.mxu3 %v2747_v3 }
  0xd4   :  { %1930 = vmatpush.bf16.msrb.mxu0 %v2547_v10  ;;  %v3911_v3 = vpop.f32.mrf.mxu0  ;;  %v3538_v10 = vld [vmem:[#allocation5 + $0x534] sm:$0xf] }
  0xd5   :  { %1943 = vmatpush.bf16.msrb.mxu1 %v2611_v12  ;;  %v3913_v8 = vpop.f32.mrf.mxu1  ;;  %v2827_v12 = vor.u32 %v3506_v5, %v2824_v6  ;;  %v2955_v13 = vor.u32 %v3538_v10, %v2952_v11  ;;  %v3626_v5 = vld [vmem:[#allocation5 + $0x7f4] sm:$0xf]  ;;  %v3304_v6 = vld [vmem:[#allocation5 + $0x7f8] sm:$0xf0]  ;;  %v3576_v11 = vld [vmem:[#allocation5 + $0x664] sm:$0xf] }
  0xd6   :  { %1956 = vmatpush.bf16.msrb.mxu2 %v2675_v34  ;;  %v2891_v34 = vor.u32 %v3522_v7, %v2888_v9 }
  0xd7   :  { %1969 = vmatpush.bf16.msrb.mxu3 %v2739_v16  ;;  %1931 = vmatmul.bf16.vlgmr.msrb.gmra.mxu0 %v3888_v0  ;;  %v2960_v0 = vld [vmem:[#allocation5 + $0x548] sm:$0xf0]  ;;  %v3520_v16 = vld [vmem:[#allocation5 + $0x4a4] sm:$0xf] }
  0xd8   :  { %1975 = vmatpush.bf16.msra.mxu0 %v2859_v17  ;;  %1944 = vmatmul.bf16.vlgmr.msrb.gmra.mxu1 %v3892_v2  ;;  %v2899_v2 = vor.u32 %v3524_v57, %v2896_v59  ;;  %v2963_v4 = vor.u32 %v3540_v61, %v2960_v0  ;;  %v2883_v30 = vor.u32 %v3520_v16, %v2880_v19  ;;  %v3112_v59 = vld [vmem:[#allocation5 + $0x678] sm:$0xf0]  ;;  %v3594_v61 = vld [vmem:[#allocation5 + $0x6f4] sm:$0xf]  ;;  %v3296_v16 = vld [vmem:[#allocation5 + $0x7e8] sm:$0xf0] }
  0xd9   :  { %1988 = vmatpush.bf16.msra.mxu1 %v2923_v20  ;;  %1957 = vmatmul.bf16.vlgmr.msrb.gmra.mxu2 %v3886_v60  ;;  %v3508_v60 = vld [vmem:[#allocation5 + $0x444] sm:$0xf]  ;;  %v2803_v0 = vor.u32 %v3500_v46, %v2800_v47 }
  0xda   :  { %2001 = vmatpush.bf16.msra.mxu2 %v2987_v21  ;;  %1970 = vmatmul.bf16.vlgmr.msrb.gmra.mxu3 %v3890_v1  ;;  %v3024_v1 = vld [vmem:[#allocation5 + $0x5c8] sm:$0xf0]  ;;  %v2835_v63 = vor.u32 %v3508_v60, %v2832_v56  ;;  %v3536_v20 = vld [vmem:[#allocation5 + $0x524] sm:$0xf] }
  0xdb   :  { %2014 = vmatpush.bf16.msra.mxu3 %v3051_v25  ;;  %v3027_v27 = vor.u32 %v3556_v62, %v3024_v1  ;;  %v2944_v21 = vld [vmem:[#allocation5 + $0x528] sm:$0xf0]  ;;  %v2819_v25 = vor.u32 %v3504_v14, %v2816_v15  ;;  %v3548_v60 = vld [vmem:[#allocation5 + $0x584] sm:$0xf]  ;;  %v3176_v62 = vld [vmem:[#allocation5 + $0x6f8] sm:$0xf0] }
  0xdc   :  { %1976 = vmatpush.bf16.msra.mxu0 %v2851_v39  ;;  %v3915_v17 = vpop.f32.mrf.mxu2  ;;  %v1726_v26 = vpop.f32.mrf.mxu0  ;;  %v2947_v31 = vor.u32 %v3536_v20, %v2944_v21  ;;  %v3011_v39 = vor.u32 %v3552_v23, %v3008_v24  ;;  %v2992_v56 = vld [vmem:[#allocation5 + $0x588] sm:$0xf0]  ;;  %v3610_v1 = vld [vmem:[#allocation5 + $0x774] sm:$0xf]  ;;  %v3179_v9 = vor.u32 %v3594_v61, %v3176_v62  ;;  %v3624_v15 = vld [vmem:[#allocation5 + $0x7e4] sm:$0xf] }
  0xdd   :  { %1989 = vmatpush.bf16.msra.mxu1 %v2915_v40  ;;  %v3917_v22 = vpop.f32.mrf.mxu3  ;;  %v1739_v38 = vpop.f32.mrf.mxu1  ;;  %v2872_v40 = vld [vmem:[#allocation5 + $0x498] sm:$0xf0]  ;;  %v2995_v7 = vor.u32 %v3548_v60, %v2992_v56  ;;  %v3232_v14 = vld [vmem:[#allocation5 + $0x768] sm:$0xf0]  ;;  %v3574_v21 = vld [vmem:[#allocation5 + $0x654] sm:$0xf]  ;;  %v3299_v26 = vor.u32 %v3624_v15, %v3296_v16 }
  0xde   :  { %2002 = vmatpush.bf16.msra.mxu2 %v2979_v41  ;;  %v3534_v41 = vld [vmem:[#allocation5 + $0x514] sm:$0xf]  ;;  %v2875_v48 = vor.u32 %v3518_v37, %v2872_v40  ;;  %v3096_v23 = vld [vmem:[#allocation5 + $0x658] sm:$0xf0]  ;;  %v3658_v40 = vld [vmem:[#allocation1 + $0x1b] sm:$0xff] }
  0xdf   :  { %2015 = vmatpush.bf16.msra.mxu3 %v3043_v45  ;;  %v2811_v45 = vor.u32 %v3502_v33, %v2808_v35  ;;  %v2939_v49 = vor.u32 %v3534_v41, %v2936_v42  ;;  %v3590_v24 = vld [vmem:[#allocation5 + $0x6d4] sm:$0xf]  ;;  %v3224_v33 = vld [vmem:[#allocation5 + $0x758] sm:$0xf0]  ;;  %v3099_v41 = vor.u32 %v3574_v21, %v3096_v23  ;;  %v3588_v46 = vld [vmem:[#allocation5 + $0x6c4] sm:$0xf] }
  0xe0   :  { %1977 = vmatpush.bf16.msra.mxu0 %v2843_v52  ;;  %v3532_v52 = vld [vmem:[#allocation5 + $0x504] sm:$0xf]  ;;  %v3656_v35 = vld [vmem:[#allocation1 + $0x12] sm:$0xff]  ;;  %v3657_v37 = vld [vmem:[#allocation1 + $0x9] sm:$0xff] }
  0xe1   :  { %1990 = vmatpush.bf16.msra.mxu1 %v2907_v54  ;;  %v3003_v54 = vor.u32 %v3550_v43, %v3000_v44  ;;  %v3622_v38 = vld [vmem:[#allocation5 + $0x7d4] sm:$0xf]  ;;  %v3572_v44 = vld [vmem:[#allocation5 + $0x644] sm:$0xf]  ;;  %v3264_v15 = vld [vmem:[#allocation5 + $0x7a8] sm:$0xf0] }
  0xe2   :  { %2003 = vmatpush.bf16.msra.mxu2 %v2971_v55  ;;  %v2928_v55 = vld [vmem:[#allocation5 + $0x508] sm:$0xf0]  ;;  %v3602_v62 = vld [vmem:[#allocation5 + $0x734] sm:$0xf] }
  0xe3   :  { %2016 = vmatpush.bf16.msra.mxu3 %v3035_v58  ;;  %v3578_v58 = vld [vmem:[#allocation5 + $0x674] sm:$0xf] }
  0xe4   :  { %1978 = vmatpush.bf16.msra.mxu0 %v2835_v63  ;;  %v1752_v53 = vpop.f32.mrf.mxu2  ;;  %v3240_v63 = vld [vmem:[#allocation5 + $0x778] sm:$0xf0]  ;;  %v3566_v23 = vld [vmem:[#allocation5 + $0x614] sm:$0xf] }
  0xe5   :  { %1991 = vmatpush.bf16.msra.mxu1 %v2899_v2  ;;  %v1765_v57 = vpop.f32.mrf.mxu3  ;;  %v2867_v2 = vor.u32 %v3516_v50, %v2864_v51  ;;  %v3243_v10 = vor.u32 %v3610_v1, %v3240_v63  ;;  %v3216_v50 = vld [vmem:[#allocation5 + $0x748] sm:$0xf0]  ;;  %v3208_v1 = vld [vmem:[#allocation5 + $0x738] sm:$0xf0]  ;;  %v3618_v63 = vld [vmem:[#allocation5 + $0x7b4] sm:$0xf] }
  0xe6   :  { %2004 = vmatpush.bf16.msra.mxu2 %v2963_v4  ;;  %v2931_v4 = vor.u32 %v3532_v52, %v2928_v55  ;;  %v3620_v52 = vld [vmem:[#allocation5 + $0x7c4] sm:$0xf]  ;;  %v3280_v53 = vld [vmem:[#allocation5 + $0x7c8] sm:$0xf0]  ;;  %v3570_v57 = vld [vmem:[#allocation5 + $0x634] sm:$0xf] }
  0xe7   :  { %2017 = vmatpush.bf16.msra.mxu3 %v3027_v27  ;;  %v3115_v27 = vor.u32 %v3578_v58, %v3112_v59  ;;  %v3080_v58 = vld [vmem:[#allocation5 + $0x638] sm:$0xf0]  ;;  %v3586_v59 = vld [vmem:[#allocation5 + $0x6b4] sm:$0xf]  ;;  %v3283_v61 = vor.u32 %v3620_v52, %v3280_v53 }
  0xe8   :  { %1979 = vmatpush.bf16.msra.mxu0 %v2827_v12  ;;  %v3307_v12 = vor.u32 %v3626_v5, %v3304_v6  ;;  %v3211_v6 = vor.u32 %v3602_v62, %v3208_v1  ;;  %v3662_v1 = vld [vmem:[#allocation1 + $0x3f] sm:$0xff] }
  0xe9   :  { %1992 = vmatpush.bf16.msra.mxu1 %v2891_v34  ;;  %v3168_v34 = vld [vmem:[#allocation5 + $0x6e8] sm:$0xf0] }
  0xea   :  { %2005 = vmatpush.bf16.msra.mxu2 %v2955_v13  ;;  %v3608_v13 = vld [vmem:[#allocation5 + $0x764] sm:$0xf]  ;;  %v3171_v19 = vor.u32 %v3592_v29, %v3168_v34  ;;  %v1725_v34 = vadd.f32 %v3911_v3, %v3905_v32  ;;  %v3192_v32 = vld [vmem:[#allocation5 + $0x718] sm:$0xf0] }
  0xeb   :  { %2018 = vmatpush.bf16.msra.mxu3 %v3019_v18  ;;  %v3107_v18 = vor.u32 %v3576_v11, %v3104_v28  ;;  %v3235_v20 = vor.u32 %v3608_v13, %v3232_v14  ;;  %v3136_v28 = vld [vmem:[#allocation5 + $0x6a8] sm:$0xf0]  ;;  %v3600_v29 = vld [vmem:[#allocation5 + $0x724] sm:$0xf] }
  0xec   :  { %1980 = vmatpush.bf16.msra.mxu0 %v2819_v25  ;;  %v3655_v25 = vld [vmem:[#allocation1] sm:$0xff]  ;;  %v3616_v14 = vld [vmem:[#allocation5 + $0x7a4] sm:$0xf]  ;;  %v1738_v3 = vadd.f32 %v3913_v8, %v1725_v34 }
  0xed   :  { %1993 = vmatpush.bf16.msra.mxu1 %v2883_v30  ;;  %v3160_v30 = vld [vmem:[#allocation5 + $0x6d8] sm:$0xf0]  ;;  %v3612_v8 = vld [vmem:[#allocation5 + $0x784] sm:$0xf]  ;;  %v3629_v34 = vld [vmem:[#allocation8 + $0x8] sm:$0xff] }
  0xee   :  { %2006 = vmatpush.bf16.msra.mxu2 %v2947_v31  ;;  %v3606_v31 = vld [vmem:[#allocation5 + $0x754] sm:$0xf]  ;;  %v3163_v42 = vor.u32 %v3590_v24, %v3160_v30  ;;  %v3064_v24 = vld [vmem:[#allocation5 + $0x618] sm:$0xf0] }
  0xef   :  { %2019 = vmatpush.bf16.msra.mxu3 %v3011_v39  ;;  %v3288_v39 = vld [vmem:[#allocation5 + $0x7d8] sm:$0xf0]  ;;  %v3227_v43 = vor.u32 %v3606_v31, %v3224_v33  ;;  %v3598_v31 = vld [vmem:[#allocation5 + $0x714] sm:$0xf] }
  0xf0   :  { %1981 = vmatpush.bf16.msra.mxu0 %v2811_v45  ;;  %v3088_v45 = vld [vmem:[#allocation5 + $0x648] sm:$0xf0]  ;;  %v3291_v47 = vor.u32 %v3622_v38, %v3288_v39  ;;  %v3128_v30 = vld [vmem:[#allocation5 + $0x698] sm:$0xf0]  ;;  %v3614_v33 = vld [vmem:[#allocation5 + $0x794] sm:$0xf]  ;;  %v3195_v39 = vor.u32 %v3598_v31, %v3192_v32 }
  0xf1   :  { %1994 = vmatpush.bf16.msra.mxu1 %v2875_v48  ;;  %v3152_v48 = vld [vmem:[#allocation5 + $0x6c8] sm:$0xf0] }
  0xf2   :  { %2007 = vmatpush.bf16.msra.mxu2 %v2939_v49  ;;  %v3604_v49 = vld [vmem:[#allocation5 + $0x744] sm:$0xf]  ;;  %v3155_v60 = vor.u32 %v3588_v46, %v3152_v48  ;;  %v3184_v46 = vld [vmem:[#allocation5 + $0x708] sm:$0xf0]  ;;  %v1751_v48 = vadd.f32 %v3915_v17, %v1738_v3  ;;  %v3634_v17 = vld [vmem:[#allocation8 + $0x30] sm:$0xff] }
  0xf3   :  { %2020 = vmatpush.bf16.msra.mxu3 %v3003_v54  ;;  %v3091_v54 = vor.u32 %v3572_v44, %v3088_v45  ;;  %v3219_v56 = vor.u32 %v3604_v49, %v3216_v50  ;;  %v3120_v44 = vld [vmem:[#allocation5 + $0x688] sm:$0xf0]  ;;  %v3596_v45 = vld [vmem:[#allocation5 + $0x704] sm:$0xf] }
  0xf4   :  { %1982 = vmatpush.bf16.msra.mxu0 %v2803_v0  ;;  %v3919_v51 = vpop.f32.mrf.mxu0  ;;  %v3144_v0 = vld [vmem:[#allocation5 + $0x6b8] sm:$0xf0]  ;;  %v3248_v49 = vld [vmem:[#allocation5 + $0x788] sm:$0xf0] }
  0xf5   :  { %1995 = vmatpush.bf16.msra.mxu1 %v2867_v2  ;;  %v3921_v55 = vpop.f32.mrf.mxu1  ;;  %v3272_v2 = vld [vmem:[#allocation5 + $0x7b8] sm:$0xf0]  ;;  %v3147_v5 = vor.u32 %v3586_v59, %v3144_v0  ;;  %v3659_v59 = vld [vmem:[#allocation1 + $0x24] sm:$0xff] }
  0xf6   :  { %2008 = vmatpush.bf16.msra.mxu2 %v2931_v4  ;;  %v3083_v4 = vor.u32 %v3570_v57, %v3080_v58  ;;  %v1764_v57 = vadd.f32 %v3917_v22, %v1751_v48  ;;  %v3661_v0 = vld [vmem:[#allocation1 + $0x36] sm:$0xff]  ;;  %v3633_v22 = vld [vmem:[#allocation8 + $0x28] sm:$0xff] }
  0xf7   :  { %2021 = vmatpush.bf16.msra.mxu3 %v2995_v7  ;;  %1983 = vmatmul.bf16.vlgmr.msra.gmra.mxu0 %v3655_v25  ;;  %v3568_v7 = vld [vmem:[#allocation5 + $0x624] sm:$0xf]  ;;  %v3582_v25 = vld [vmem:[#allocation5 + $0x694] sm:$0xf]  ;;  %v3639_v48 = vld [vmem:[#allocation8 + $0x58] sm:$0xff] }
  0xf8   :  { %2027 = vmatpush.bf16.msrb.mxu0 %v3115_v27  ;;  %1996 = vmatmul.bf16.vlgmr.msra.gmra.mxu1 %v3657_v37  ;;  %v3072_v27 = vld [vmem:[#allocation5 + $0x628] sm:$0xf0]  ;;  %v3067_v37 = vor.u32 %v3566_v23, %v3064_v24  ;;  %v3131_v38 = vor.u32 %v3582_v25, %v3128_v30  ;;  %v1777_v58 = vadd.f32 %v3919_v51, %v1764_v57 }
  0xf9   :  { %2040 = vmatpush.bf16.msrb.mxu1 %v3179_v9  ;;  %2009 = vmatmul.bf16.vlgmr.msra.gmra.mxu2 %v3656_v35  ;;  %v3584_v9 = vld [vmem:[#allocation5 + $0x6a4] sm:$0xf]  ;;  %v3256_v35 = vld [vmem:[#allocation5 + $0x798] sm:$0xf0] }
  0xfa   :  { %2053 = vmatpush.bf16.msrb.mxu2 %v3243_v10  ;;  %2022 = vmatmul.bf16.vlgmr.msra.gmra.mxu3 %v3658_v40  ;;  %v3275_v10 = vor.u32 %v3618_v63, %v3272_v2  ;;  %v3564_v40 = vld [vmem:[#allocation5 + $0x604] sm:$0xf]  ;;  %v1790_v62 = vadd.f32 %v3921_v55, %v1777_v58  ;;  %v3630_v55 = vld [vmem:[#allocation8 + $0x10] sm:$0xff] }
  0xfb   :  { %2066 = vmatpush.bf16.msrb.mxu3 %v3307_v12  ;;  %v3200_v12 = vld [vmem:[#allocation5 + $0x728] sm:$0xf0]  ;;  %v3632_v2 = vld [vmem:[#allocation8 + $0x20] sm:$0xff] }
  0xfc   :  { %2028 = vmatpush.bf16.msrb.mxu0 %v3107_v18  ;;  %v3923_v11 = vpop.f32.mrf.mxu2  ;;  %v1778_v16 = vpop.f32.mrf.mxu0  ;;  %v3075_v18 = vor.u32 %v3568_v7, %v3072_v27  ;;  %v3203_v21 = vor.u32 %v3600_v29, %v3200_v12  ;;  %v3631_v7 = vld [vmem:[#allocation8 + $0x18] sm:$0xff] }
  0xfd   :  { %2041 = vmatpush.bf16.msrb.mxu1 %v3171_v19  ;;  %v3927_v13 = vpop.f32.mrf.mxu3  ;;  %v1791_v19 = vpop.f32.mrf.mxu1  ;;  %v1803_v63 = vadd.f32 %v3923_v11, %v1790_v62  ;;  %v3628_v16 = vld [vmem:[#allocation8] sm:$0xff] }
  0xfe   :  { %2054 = vmatpush.bf16.msrb.mxu2 %v3235_v20  ;;  %v3139_v20 = vor.u32 %v3584_v9, %v3136_v28  ;;  %v344_v19 = vperm.slane %v3902_v36, 1  ;;  %v3642_v36 = vld [vmem:[#allocation8 + $0x70] sm:$0xff] }
  0xff   :  { %2067 = vmatpush.bf16.msrb.mxu3 %v3299_v26  ;;  %v3267_v26 = vor.u32 %v3616_v14, %v3264_v15 }
 0x100   :  { %2029 = vmatpush.bf16.msrb.mxu0 %v3099_v41  ;;  %v3056_v41 = vld [vmem:[#allocation5 + $0x608] sm:$0xf0] }
 0x101   :  { %2042 = vmatpush.bf16.msrb.mxu1 %v3163_v42  ;;  %v3580_v42 = vld [vmem:[#allocation5 + $0x684] sm:$0xf]  ;;  %v3059_v52 = vor.u32 %v3564_v40, %v3056_v41  ;;  %v3643_v41 = vld [vmem:[#allocation8 + $0x78] sm:$0xff] }
 0x102   :  { %2055 = vmatpush.bf16.msrb.mxu2 %v3227_v43  ;;  %v3259_v43 = vor.u32 %v3614_v33, %v3256_v35  ;;  %v3123_v53 = vor.u32 %v3580_v42, %v3120_v44 }
 0x103   :  { %2068 = vmatpush.bf16.msrb.mxu3 %v3291_v47 }
 0x104   :  { %2030 = vmatpush.bf16.msrb.mxu0 %v3091_v54  ;;  %v1804_v47 = vpop.f32.mrf.mxu2  ;;  %v3187_v54 = vor.u32 %v3596_v45, %v3184_v46  ;;  %v3641_v45 = vld [vmem:[#allocation8 + $0x68] sm:$0xff] }
 0x105   :  { %2043 = vmatpush.bf16.msrb.mxu1 %v3155_v60  ;;  %v1817_v50 = vpop.f32.mrf.mxu3  ;;  %v3251_v60 = vor.u32 %v3612_v8, %v3248_v49  ;;  %v3640_v47 = vld [vmem:[#allocation8 + $0x60] sm:$0xff]  ;;  %v3638_v49 = vld [vmem:[#allocation8 + $0x50] sm:$0xff] }
 0x106   :  { %2056 = vmatpush.bf16.msrb.mxu2 %v3219_v56  ;;  %v3635_v56 = vld [vmem:[#allocation8 + $0x38] sm:$0xff] }
 0x107   :  { %2069 = vmatpush.bf16.msrb.mxu3 %v3283_v61  ;;  %v3660_v61 = vld [vmem:[#allocation1 + $0x2d] sm:$0xff] }
 0x108   :  { %2031 = vmatpush.bf16.msrb.mxu0 %v3083_v4 }
 0x109   :  { %2044 = vmatpush.bf16.msrb.mxu1 %v3147_v5  ;;  %v1816_v5 = vadd.f32 %v3927_v13, %v1803_v63 }
 0x10a   :  { %2057 = vmatpush.bf16.msrb.mxu2 %v3211_v6 }
 0x10b   :  { %2070 = vmatpush.bf16.msrb.mxu3 %v3275_v10 }
 0x10c   :  { %2032 = vmatpush.bf16.msrb.mxu0 %v3075_v18 }
 0x10d   :  { %2045 = vmatpush.bf16.msrb.mxu1 %v3139_v20 }
 0x10e   :  { %2058 = vmatpush.bf16.msrb.mxu2 %v3203_v21 }
 0x10f   :  { %2071 = vmatpush.bf16.msrb.mxu3 %v3267_v26 }
 0x110   :  { %2033 = vmatpush.bf16.msrb.mxu0 %v3067_v37 }
 0x111   :  { %2046 = vmatpush.bf16.msrb.mxu1 %v3131_v38 }
 0x112   :  { %2059 = vmatpush.bf16.msrb.mxu2 %v3195_v39 }
 0x113   :  { %2072 = vmatpush.bf16.msrb.mxu3 %v3259_v43 }
 0x114   :  { %2034 = vmatpush.bf16.msrb.mxu0 %v3059_v52  ;;  %v1828_v51 = vpop.f32.mrf.mxu0 }
 0x115   :  { %2047 = vmatpush.bf16.msrb.mxu1 %v3123_v53  ;;  %v1841_v4 = vpop.f32.mrf.mxu1  ;;  %v1829_v6 = vadd.f32 %v1828_v51, %v1816_v5  ;;  %v3637_v53 = vld [vmem:[#allocation8 + $0x48] sm:$0xff] }
 0x116   :  { %2060 = vmatpush.bf16.msrb.mxu2 %v3187_v54 }
 0x117   :  { %2073 = vmatpush.bf16.msrb.mxu3 %v3251_v60  ;;  %2035 = vmatmul.bf16.vlgmr.msrb.gmra.mxu0 %v3659_v59  ;;  %v1842_v9 = vadd.f32 %v1841_v4, %v1829_v6 }
 0x118   :  { %2222 = vmatpush.bf16.msra.mxu0 %v3635_v56  ;;  %2048 = vmatmul.bf16.vlgmr.msrb.gmra.mxu1 %v3660_v61 }
 0x119   :  { %2061 = vmatmul.bf16.vlgmr.msrb.gmra.mxu2 %v3661_v0  ;;  %2235 = vmatpush.bf16.msra.mxu1 %v3643_v41 }
 0x11a   :  { %2074 = vmatmul.bf16.vlgmr.msrb.gmra.mxu3 %v3662_v1 }
 0x11c   :  { %2223 = vmatpush.bf16.msra.mxu0 %v3634_v17  ;;  %v1854_v27 = vpop.f32.mrf.mxu2  ;;  %v1830_v28 = vpop.f32.mrf.mxu0  ;;  %v3636_v17 = vld [vmem:[#allocation8 + $0x40] sm:$0xff] }
 0x11d   :  { %v1867_v10 = vpop.f32.mrf.mxu3  ;;  %v1843_v29 = vpop.f32.mrf.mxu1  ;;  %v1855_v12 = vadd.f32 %v1854_v27, %v1842_v9  ;;  %2236 = vmatpush.bf16.msra.mxu1 %v3642_v36 }
 0x11f   :  { %v1868_v11 = vadd.f32 %v1867_v10, %v1855_v12 }
 0x120   :  { %2224 = vmatpush.bf16.msra.mxu0 %v3633_v22 }
 0x121   :  { %v3936_v18 = vmax.f32 %v1868_v11, 0.0  ;;  %2237 = vmatpush.bf16.msra.mxu1 %v3641_v45 }
 0x123   :  { %v2088_v13 = vpack.c.bf16 %v3936_v18, %v3936_v18 }
 0x124   :  { %2225 = vmatpush.bf16.msra.mxu0 %v3632_v2  ;;  %v1856_v14 = vpop.f32.mrf.mxu2 }
 0x125   :  { %v1869_v15 = vpop.f32.mrf.mxu3  ;;  %2238 = vmatpush.bf16.msra.mxu1 %v3640_v47 }
 0x128   :  { %2226 = vmatpush.bf16.msra.mxu0 %v3631_v7 }
 0x129   :  { %2239 = vmatpush.bf16.msra.mxu1 %v3639_v48 }
 0x12c   :  { %2227 = vmatpush.bf16.msra.mxu0 %v3630_v55 }
 0x12d   :  { %2240 = vmatpush.bf16.msra.mxu1 %v3638_v49 }
 0x130   :  { %2228 = vmatpush.bf16.msra.mxu0 %v3629_v34 }
 0x131   :  { %2241 = vmatpush.bf16.msra.mxu1 %v3637_v53 }
 0x134   :  { %2229 = vmatpush.bf16.msra.mxu0 %v3628_v16  ;;  %v1880_v20 = vpop.f32.mrf.mxu0 }
 0x135   :  { %v1881_v21 = vadd.f32 %v1880_v20, %v344_v19  ;;  %v1893_v23 = vpop.f32.mrf.mxu1  ;;  %2242 = vmatpush.bf16.msra.mxu1 %v3636_v17  ;;  %v3654_v19 = vld [vmem:[%s3955_s4] ss:$0 sm:$0xff] }
 0x137   :  { %2230 = vmatmul.bf16.vlgmr.msra.gmra.mxu0 %v2088_v13  ;;  %v1894_v24 = vadd.f32 %v1893_v23, %v1881_v21 }
 0x13c   :  { %v1906_v25 = vpop.f32.mrf.mxu2  ;;  %v1882_v32 = vpop.f32.mrf.mxu0 }
 0x13d   :  { %v1907_v26 = vadd.f32 %v1906_v25, %v1894_v24  ;;  %v1919_v30 = vpop.f32.mrf.mxu3  ;;  %v1895_v3 = vpop.f32.mrf.mxu1 }
 0x13f   :  { %v1920_v31 = vadd.f32 %v1919_v30, %v1907_v26 }
 0x144   :  { %v1908_v33 = vpop.f32.mrf.mxu2 }
 0x145   :  { %v1921_v35 = vpop.f32.mrf.mxu3 }
 0x154   :  { %v1932_v37 = vpop.f32.mrf.mxu0 }
 0x155   :  { %v1945_v38 = vpop.f32.mrf.mxu1  ;;  %v1933_v52 = vadd.f32 %v1932_v37, %v1920_v31 }
 0x157   :  { %v1946_v57 = vadd.f32 %v1945_v38, %v1933_v52 }
 0x15c   :  { %v1958_v39 = vpop.f32.mrf.mxu2  ;;  %v1934_v42 = vpop.f32.mrf.mxu0 }
 0x15d   :  { %v1971_v40 = vpop.f32.mrf.mxu3  ;;  %v1947_v43 = vpop.f32.mrf.mxu1  ;;  %v1959_v59 = vadd.f32 %v1958_v39, %v1946_v57 }
 0x15f   :  { %v1972_v62 = vadd.f32 %v1971_v40, %v1959_v59 }
 0x164   :  { %v1960_v44 = vpop.f32.mrf.mxu2 }
 0x165   :  { %v1973_v46 = vpop.f32.mrf.mxu3 }
 0x174   :  { %v1984_v8 = vpop.f32.mrf.mxu0 }
 0x175   :  { %v1997_v50 = vpop.f32.mrf.mxu1  ;;  %v1985_v1 = vadd.f32 %v1984_v8, %v1972_v62 }
 0x177   :  { %v1998_v22 = vadd.f32 %v1997_v50, %v1985_v1 }
 0x17c   :  { %v2010_v54 = vpop.f32.mrf.mxu2  ;;  %v1986_v56 = vpop.f32.mrf.mxu0 }
 0x17d   :  { %v2023_v60 = vpop.f32.mrf.mxu3  ;;  %v1999_v58 = vpop.f32.mrf.mxu1  ;;  %v2011_v63 = vadd.f32 %v2010_v54, %v1998_v22 }
 0x17f   :  { %v2024_v51 = vadd.f32 %v2023_v60, %v2011_v63 }
 0x184   :  { %v2012_v61 = vpop.f32.mrf.mxu2 }
 0x185   :  { %v2025_v0 = vpop.f32.mrf.mxu3 }
 0x194   :  { %v2036_v2 = vpop.f32.mrf.mxu0 }
 0x195   :  { %v2049_v4 = vpop.f32.mrf.mxu1  ;;  %v2037_v5 = vadd.f32 %v2036_v2, %v2024_v51 }
 0x197   :  { %v2050_v6 = vadd.f32 %v2049_v4, %v2037_v5 }
 0x19c   :  { %v2062_v7 = vpop.f32.mrf.mxu2  ;;  %v2038_v10 = vpop.f32.mrf.mxu0 }
 0x19d   :  { %v2063_v27 = vadd.f32 %v2062_v7, %v2050_v6  ;;  %v2075_v9 = vpop.f32.mrf.mxu3  ;;  %v2051_v28 = vpop.f32.mrf.mxu1 }
 0x19f   :  { %v2076_v55 = vadd.f32 %v2075_v9, %v2063_v27 }
 0x1a1   :  { %v2080_v29 = vmax.f32 %v2076_v55, 0.0 }
 0x1a3   :  { %v2083_v12 = vrot.slane %v2080_v29, 6  ;;  %v2089_v34 = vpack.c.bf16 %v2080_v29, %v2080_v29 }
 0x1a4   :  { %v2064_v11 = vpop.f32.mrf.mxu2 }
 0x1a5   :  { %v2077_v14 = vpop.f32.mrf.mxu3  ;;  %2243 = vmatmul.bf16.vlgmr.msra.gmra.mxu1 %v2089_v34  ;;  %v2085_v15 = vsel %vm2084_vm0, %v3936_v18, %v2083_v12 }
 0x1a6   :  { %2087 = vst [vmem:[#allocation10] sm:$0xf] %v2085_v15 }
 0x1a7   :  { %2259 = dma.vmem_to_hbm [thread:$0]  %s2255_s3, 64, %s2257_s21, [#allocation4]  }
 0x1b4   :  { %v2231_v16 = vpop.f32.mrf.mxu0 }
 0x1b5   :  { %v2232_v18 = vadd.f32 %v3654_v19, %v2231_v16 }
 0x1bc   :  { %v2233_v13 = vpop.f32.mrf.mxu0 }
 0x222   :  { %v2244_v20 = vpop.f32.mrf.mxu1 }
 0x223   :  { %v2245_v21 = vadd.f32 %v2244_v20, %v2232_v18 }
 0x225   :  { %2248 = vst [vmem:[#allocation11] sm:$0x3] %v2245_v21 }
 0x226   :  { %2270 = dma.vmem_to_hbm [thread:$0]  %s2266_s25, 32, %s2268_s28, [#allocation12]  }
 0x22a   :  { %v2246_v23 = vpop.f32.mrf.mxu1 }
 0x22b   :  { %3813 = dma.done.wait [#allocation4], 64  }
 0x22c   :  { %3814 = vsyncadd [#allocation4], 4294967232 }
 0x22d   :  { %3815 = dma.done.wait [#allocation12], 32  }
 0x22e   :  { %3816 = vsyncadd [#allocation12], 4294967264 }
 0x22f   :  { %2279 = vsyncpa [#allocation3], 1 }
 0x230   :  { %2280 = vsyncpa [#allocation6], 1 }
 0x231   :  { %2281 = vsyncpa [#allocation9], 1 }
 0x232   :  { %2282 = vsyncpa [#allocation4], 1 }
 0x233   :  { %2283 = vsyncpa [#allocation12], 1 }

</bundles_post_ra>
